<compile_context>
chip_gen: v7x
topology: tpu7x:2x2x1
jax: 0.10.0
libtpu: 0.0.40
codegen_flags: <defaults>
</compile_context>

<pallas_src>
import functools
import numpy as np

import jax
import jax.numpy as jnp
from jax.experimental import pallas as pl
from jax.experimental.pallas import tpu as pltpu


LANES = 128
EPS = 1e-5


def _round_up(x, m):
    return (x + m - 1) // m * m


def _is_pow2(x):
    return x > 0 and (x & (x - 1)) == 0


def _pick_row_tile(p):
    for rt in (64, 32, 16, 8):
        if p % rt == 0:
            return rt
    return p


def _pick_samples_per_step(n, p, k, cp, cout, max_b=16, vmem_budget=24 << 20):
    """Largest divisor B of n such that (a) the grid keeps >= 2 steps when
    possible (v7x: two TensorCores must both get work) and (b) the
    double-buffered blocks plus the f32 staging scratch stay well under the
    scoped-VMEM default on every generation."""
    best = 1
    for b in range(1, min(n, max_b) + 1):
        if n % b:
            continue
        if n >= 2 and n // b < 2:       # keep the "parallel" axis splittable (v7x)
            continue
        vmem = (2 * b * p * k * 2       # patches, bf16, double-buffered
                + 2 * b * p * cout * 2  # output,  bf16, double-buffered
                + b * p * cp * 4        # f32 staging scratch
                + 2 * k * cp * 2        # weight (double-buffered)
                + 2 * 8 * cp * 4)       # packed per-channel constants
        if vmem <= vmem_budget:
            best = b
    return best


def _group_allreduce_lanes(s, cpg):
    """Sum within aligned groups of `cpg` consecutive lanes; the group sum is
    broadcast back to every lane of its group.  cpg must be a power of two.
    Uses XLU lane rolls (idle unit in this kernel) instead of a (Cp, Cp)
    group-averaging matmul."""
    if cpg == 1:
        return s
    n = s.shape[-1]
    lane = jax.lax.broadcasted_iota(jnp.int32, s.shape, s.ndim - 1)
    d = 1
    while d < cpg:
        hi = pltpu.roll(s, shift=(n - d) % n, axis=s.ndim - 1)   # s[lane + d]
        lo = pltpu.roll(s, shift=d, axis=s.ndim - 1)             # s[lane - d]
        s = s + jnp.where((lane % (2 * d)) < d, hi, lo)
        d *= 2
    return s


# ----------------------------------------------------------------------------
# Pallas kernel: B samples per grid step, fused matmul + GroupNorm + ELU
# ----------------------------------------------------------------------------
def conv_gn_elu_kernel(p_ref, w_ref, c_ref, o_ref, y_scr, *,
                       cpg, norm, eps, row_tile):
    """p_ref: (B, P, K)    bf16 im2col patches of B samples
       w_ref: (K, Cp)      bf16 conv weight, Cout zero-padded to Cp (128-multiple)
       c_ref: (8, Cp)      f32 packed per-channel constants, rows [bias, gamma, beta]
       o_ref: (B, P, cout) bf16 output, UNPADDED channels (masked vst, small)
       y_scr: (B, P, Cp)   f32 staging scratch for the raw conv result
    """
    batch, P, K = p_ref.shape
    Cp = w_ref.shape[-1]
    cout = o_ref.shape[-1]

    # Conv as one MXU matmul over every sample of this grid step; the raw
    # (bias-free) result is staged straight to VMEM so the GroupNorm passes
    # below can stream it back in small row tiles (bounded vreg pressure).
    y_scr[...] = jnp.dot(
        p_ref[...].reshape(batch * P, K), w_ref[...],
        preferred_element_type=jnp.float32).reshape(batch, P, Cp)

    bias = c_ref[0:1, :]
    gamma = c_ref[1:2, :]
    beta = c_ref[2:3, :]
    inv_count = 1.0 / float(P * cpg)
    n_tiles = P // row_tile

    for b in range(batch):                         # static unroll over samples
        ysb = y_scr.at[b]                          # (P, Cp) VMEM view
        osb = o_ref.at[b]                          # (P, cout) view

        if norm:
            # Pass 1: per-channel column sums, row-tiled.
            def s1_body(t, acc):
                st = pl.multiple_of(t * row_tile, row_tile)
                return acc + jnp.sum(ysb[pl.ds(st, row_tile), :],
                                     axis=0, keepdims=True)
            s1 = jax.lax.fori_loop(0, n_tiles, s1_body,
                                   jnp.zeros((1, Cp), jnp.float32), unroll=True)
            s1 = s1 + float(P) * bias              # fold conv bias into the sums
            mean = _group_allreduce_lanes(s1, cpg) * inv_count

            # Pass 2: centered square sums (two-pass variance, no cancellation).
            off = bias - mean                      # per-channel centering offset

            def s2_body(t, acc):
                st = pl.multiple_of(t * row_tile, row_tile)
                yc = ysb[pl.ds(st, row_tile), :] + off
                return acc + jnp.sum(yc * yc, axis=0, keepdims=True)
            s2 = jax.lax.fori_loop(0, n_tiles, s2_body,
                                   jnp.zeros((1, Cp), jnp.float32), unroll=True)
            var = _group_allreduce_lanes(s2, cpg) * inv_count

            scale = jax.lax.rsqrt(var + eps) * gamma   # z = y*scale + shift
            shift = off * scale + beta
        else:
            scale = None
            shift = bias                               # z = y + bias

        # Pass 3: normalize + affine + ELU + store, row-tiled.
        def out_body(t, carry):
            st = pl.multiple_of(t * row_tile, row_tile)
            z = ysb[pl.ds(st, row_tile), :]
            z = z * scale + shift if norm else z + shift
            # ELU(alpha=1); exp argument clamped so the untaken branch is finite.
            z = jnp.where(z > 0.0, z, jnp.exp(jnp.minimum(z, 0.0)) - 1.0)
            osb[pl.ds(st, row_tile), :] = z[:, :cout].astype(o_ref.dtype)
            return carry
        jax.lax.fori_loop(0, n_tiles, out_body, 0, unroll=True)


# ----------------------------------------------------------------------------
# JAX glue
# ----------------------------------------------------------------------------
def extract_patches(x_nhwc, ksize, stride, pad):
    """im2col: (N, H, W, C) -> (N, OH*OW, ksize*ksize*C), column order (kh, kw, c)."""
    N, H, W, C = x_nhwc.shape
    xp = jnp.pad(x_nhwc, ((0, 0), (pad, pad), (pad, pad), (0, 0)))
    oh = (H + 2 * pad - ksize) // stride + 1
    ow = (W + 2 * pad - ksize) // stride + 1
    cols = []
    for i in range(ksize):
        for j in range(ksize):
            cols.append(xp[:, i:i + stride * (oh - 1) + 1:stride,
                           j:j + stride * (ow - 1) + 1:stride, :])
    p = jnp.stack(cols, axis=3)                                   # (N,oh,ow,k*k,C)
    return p.reshape(N, oh * ow, ksize * ksize * C), oh, ow


def conv_unit_forward(params, x_nchw):
    """ConvUnit forward: NCHW in -> NCHW out (PyTorch convention), bf16 output
    (the next ConvUnit consumes bf16 anyway; GN/ELU math is f32 in-kernel)."""
    ksize, stride, pad = params["ksize"], params["stride"], params["pad"]
    cout, cp, norm = params["out_c"], params["cout_pad"], params["norm"]
    # NOTE: n_groupf is channels-per-group; PyTorch builds
    # GroupNorm(num_groups=out_c // n_groupf, num_channels=out_c).
    cpg = params["n_groupf"]

    x = jnp.transpose(x_nchw, (0, 2, 3, 1))                       # NCHW -> NHWC
    patches, oh, ow = extract_patches(x, ksize, stride, pad)
    N, P, K = patches.shape
    patches = patches.astype(jnp.bfloat16)                        # halve DMA bytes

    B = _pick_samples_per_step(N, P, K, cp, cout)
    rt = _pick_row_tile(P)

    kern = functools.partial(conv_gn_elu_kernel, cpg=cpg, norm=norm,
                             eps=EPS, row_tile=rt)
    out = pl.pallas_call(
        kern,
        out_shape=jax.ShapeDtypeStruct((N, P, cout), jnp.bfloat16),
        grid=(N // B,),
        in_specs=[
            # If a profile shows the patch DMA exposed at larger B, switch this
            # spec to pipeline_mode=pl.Buffered(3); default double-buffering is
            # fine at these sizes.
            pl.BlockSpec((B, P, K), lambda n: (n, 0, 0)),
            pl.BlockSpec((K, cp), lambda n: (0, 0)),
            pl.BlockSpec((8, cp), lambda n: (0, 0)),
        ],
        out_specs=pl.BlockSpec((B, P, cout), lambda n: (n, 0, 0)),
        scratch_shapes=[pltpu.VMEM((B, P, cp), jnp.float32)],
        compiler_params=pltpu.CompilerParams(
            dimension_semantics=("parallel",)),
    )(patches, params["w_mat"], params["const"])

    out = out.reshape(N, oh, ow, cout)
    return jnp.transpose(out, (0, 3, 1, 2))                       # NHWC -> NCHW


# ----------------------------------------------------------------------------
# Parameter construction (deterministic, synthetic)
# ----------------------------------------------------------------------------
def spectral_normalize(w_oihw, key, n_iter=20, eps=1e-12):
    """W / sigma_max, sigma from power iteration on W.reshape(out_c, -1)."""
    oc = w_oihw.shape[0]
    wmat = w_oihw.reshape(oc, -1)
    u = jax.random.normal(key, (oc,), jnp.float32)
    u = u / (jnp.linalg.norm(u) + eps)
    v = wmat.T @ u
    for _ in range(n_iter):
        v = wmat.T @ u
        v = v / (jnp.linalg.norm(v) + eps)
        u = wmat @ v
        u = u / (jnp.linalg.norm(u) + eps)
    sigma = u @ (wmat @ v)
    return w_oihw / sigma


def make_conv_unit(key, in_c, out_c, n_groupf=4, kernel_size=3, stride=1,
                   padding=1, bias=True, norm=True):
    if norm:
        assert out_c % n_groupf == 0, "GroupNorm needs out_c % n_groupf == 0"
        # TODO(synk): non-power-of-two channels-per-group would need a matmul
        # based group reduction instead of the lane-roll butterfly.
        assert _is_pow2(n_groupf), "lane-roll group reduce needs power-of-2 cpg"

    kw, kb, ku = jax.random.split(key, 3)
    w = jax.random.normal(kw, (out_c, in_c, kernel_size, kernel_size),
                          jnp.float32) / np.sqrt(in_c * kernel_size * kernel_size)
    w = spectral_normalize(w, ku)                                 # spectral_norm

    bias_vec = (0.01 * jax.random.normal(kb, (out_c,), jnp.float32)
                if bias else jnp.zeros((out_c,), jnp.float32))
    gamma = jnp.ones((out_c,), jnp.float32)                       # GroupNorm defaults
    beta = jnp.zeros((out_c,), jnp.float32)

    K = kernel_size * kernel_size * in_c
    cp = _round_up(max(out_c, LANES), LANES)                      # lane-padded Cout (in-kernel only)

    # matmul weight laid out to match the (kh, kw, cin) patch column order.
    w_mat = jnp.transpose(w, (2, 3, 1, 0)).reshape(K, out_c)
    w_mat = jnp.pad(w_mat, ((0, 0), (0, cp - out_c))).astype(jnp.bfloat16)

    # pack all per-channel constants into one contiguous 128-lane-padded block.
    const = np.zeros((8, cp), np.float32)
    const[0, :out_c] = np.asarray(bias_vec)
    const[1, :out_c] = np.asarray(gamma)
    const[2, :out_c] = np.asarray(beta)

    return dict(w_oihw=w, bias_vec=bias_vec, gamma=gamma, beta=beta,
                w_mat=w_mat, const=jnp.asarray(const),
                in_c=in_c, out_c=out_c, cout_pad=cp, n_groupf=n_groupf,
                ksize=kernel_size, stride=stride, pad=padding,
                bias=bias, norm=norm)


# ----------------------------------------------------------------------------
# Pure-JAX f32 reference (for correctness cross-check)
# ----------------------------------------------------------------------------
def conv_unit_reference(params, x_nchw):
    y = jax.lax.conv_general_dilated(
        x_nchw, params["w_oihw"],
        window_strides=(params["stride"],) * 2,
        padding=[(params["pad"], params["pad"])] * 2,
        dimension_numbers=("NCHW", "OIHW", "NCHW"))
    y = y + params["bias_vec"].reshape(1, -1, 1, 1)
    if params["norm"]:
        N, C, H, W = y.shape
        G = C // params["n_groupf"]          # num_groups, as in GroupNorm(out_c//n_groupf, out_c)
        yg = y.reshape(N, G, -1)
        mean = yg.mean(axis=-1, keepdims=True)
        var = yg.var(axis=-1, keepdims=True)
        yg = (yg - mean) * jax.lax.rsqrt(var + EPS)
        y = yg.reshape(N, C, H, W)
        y = (y * params["gamma"].reshape(1, -1, 1, 1)
             + params["beta"].reshape(1, -1, 1, 1))
    return jnp.where(y > 0.0, y, jnp.exp(jnp.minimum(y, 0.0)) - 1.0)


# ----------------------------------------------------------------------------
if __name__ == "__main__":
    key = jax.random.PRNGKey(0)
    k1, k2, kx = jax.random.split(key, 3)

    # Two ConvUnits chained (exercises stride=1/bias=True and stride=2/bias=False).
    cu1 = make_conv_unit(k1, in_c=4, out_c=32, n_groupf=4,
                         kernel_size=3, stride=1, padding=1, bias=True)
    cu2 = make_conv_unit(k2, in_c=32, out_c=64, n_groupf=4,
                         kernel_size=3, stride=2, padding=1, bias=False)

    x = jax.random.normal(kx, (2, 4, 16, 16), jnp.float32)        # NCHW

    y1 = conv_unit_forward(cu1, x)
    y2 = conv_unit_forward(cu2, y1)
    y1, y2 = jax.block_until_ready((y1, y2))

    assert y1.shape == (2, 32, 16, 16) and y1.dtype == jnp.bfloat16
    assert y2.shape == (2, 64, 8, 8) and y2.dtype == jnp.bfloat16
    y1f = np.asarray(y1.astype(jnp.float32))
    y2f = np.asarray(y2.astype(jnp.float32))
    assert np.all(np.isfinite(y1f)) and np.all(np.isfinite(y2f))

    # Cross-check against a pure-JAX f32 reference (bf16 MXU operands and bf16
    # output in the kernel -> loose tolerances).
    r1 = conv_unit_reference(cu1, x)
    r2 = conv_unit_reference(cu2, r1)
    np.testing.assert_allclose(y1f, np.asarray(r1), atol=0.15, rtol=0.15)
    np.testing.assert_allclose(y2f, np.asarray(r2), atol=0.2, rtol=0.2)

    print("KERNEL_OK")
</pallas_src>

<mosaic_0001>
module attributes {stable_mosaic.version = 11 : i64} {
  func.func @conv_gn_elu_kernel(%arg0: i32, %arg1: memref<1x256x36xbf16, #tpu.memory_space<vmem>>, %arg2: memref<36x128xbf16, #tpu.memory_space<vmem>>, %arg3: memref<8x128xf32, #tpu.memory_space<vmem>>, %arg4: memref<1x256x32xbf16, #tpu.memory_space<vmem>>, %arg5: memref<1x256x128xf32, #tpu.memory_space<vmem>>) attributes {dimension_semantics = [#tpu.dimension_semantics<parallel>], iteration_bounds = array<i64: 2>, scalar_prefetch = 0 : i64, scratch_operands = 1 : i64, tpu.core_type = #tpu.core_type<tc>, window_params = [{transform_indices = @transform_0, window_bounds = array<i64: 1, 256, 36>}, {pipeline_mode = #tpu.pipeline_mode<synchronous>, transform_indices = @transform_1, window_bounds = array<i64: 36, 128>}, {pipeline_mode = #tpu.pipeline_mode<synchronous>, transform_indices = @transform_2, window_bounds = array<i64: 8, 128>}, {transform_indices = @transform_3, window_bounds = array<i64: 1, 256, 32>}]} {
    %c0 = arith.constant 0 : index
    %c0_0 = arith.constant 0 : index
    %c0_1 = arith.constant 0 : index
    %0 = vector.load %arg1[%c0, %c0_0, %c0_1] : memref<1x256x36xbf16, #tpu.memory_space<vmem>>, vector<1x256x36xbf16>
    %1 = vector.shape_cast %0 : vector<1x256x36xbf16> to vector<256x36xbf16>
    %c0_2 = arith.constant 0 : index
    %c0_3 = arith.constant 0 : index
    %2 = vector.load %arg2[%c0_2, %c0_3] : memref<36x128xbf16, #tpu.memory_space<vmem>>, vector<36x128xbf16>
    %cst = arith.constant dense<0.000000e+00> : vector<256x128xf32>
    %3 = tpu.matmul %1, %2, %cst {dimension_numbers = #tpu.dot_dimension_numbers<[1], [0], [0], [1], [0, 0, 1, 1], [], []>} : vector<256x36xbf16>, vector<36x128xbf16>, vector<256x128xf32> -> vector<256x128xf32>
    %4 = vector.shape_cast %3 : vector<256x128xf32> to vector<1x256x128xf32>
    %c0_4 = arith.constant 0 : index
    %c0_5 = arith.constant 0 : index
    %c0_6 = arith.constant 0 : index
    %5 = vector.load %arg5[%c0_4, %c0_5, %c0_6] : memref<1x256x128xf32, #tpu.memory_space<vmem>>, vector<1x256x128xf32>
    tpu.vector_store %arg5[%c0_4, %c0_5, %c0_6], %4 {strides = array<i32>} : memref<1x256x128xf32, #tpu.memory_space<vmem>>, vector<1x256x128xf32>,
    %c0_7 = arith.constant 0 : index
    %c0_8 = arith.constant 0 : index
    %6 = vector.load %arg3[%c0_7, %c0_8] : memref<8x128xf32, #tpu.memory_space<vmem>>, vector<1x128xf32>
    %c1 = arith.constant 1 : index
    %c0_9 = arith.constant 0 : index
    %7 = vector.load %arg3[%c1, %c0_9] : memref<8x128xf32, #tpu.memory_space<vmem>>, vector<1x128xf32>
    %c2 = arith.constant 2 : index
    %c0_10 = arith.constant 0 : index
    %8 = vector.load %arg3[%c2, %c0_10] : memref<8x128xf32, #tpu.memory_space<vmem>>, vector<1x128xf32>
    %cst_11 = arith.constant 0.000000e+00 : f32
    %9 = vector.broadcast %cst_11 : f32 to vector<1x128xf32>
    %c0_i32 = arith.constant 0 : i32
    %c0_i32_12 = arith.constant 0 : i32
    %c64_i32 = arith.constant 64 : i32
    %10 = arith.muli %c0_i32_12, %c64_i32 : i32
    %11 = tpu.assume_multiple %10, 64 : i32
    %c0_i32_13 = arith.constant 0 : i32
    %c0_i32_14 = arith.constant 0 : i32
    %12 = tpu.memref_slice %arg5[%c0_i32, %c0_i32_13, %c0_i32_14] : memref<1x256x128xf32, #tpu.memory_space<vmem>> -> memref<1x256x128xf32, #tpu.memory_space<vmem>>
    %13 = tpu.memref_squeeze %12 : memref<1x256x128xf32, #tpu.memory_space<vmem>> -> memref<256x128xf32, #tpu.memory_space<vmem>>
    %14 = arith.index_cast %11 : i32 to index
    %c0_15 = arith.constant 0 : index
    %15 = vector.load %13[%14, %c0_15] : memref<256x128xf32, #tpu.memory_space<vmem>>, vector<64x128xf32>
    %cst_16 = arith.constant dense<0.000000e+00> : vector<128xf32>
    %16 = vector.multi_reduction <add>, %15, %cst_16 [0] : vector<64x128xf32> to vector<128xf32>
    %17 = vector.shape_cast %16 : vector<128xf32> to vector<1x128xf32>
    %18 = arith.addf %9, %17 : vector<1x128xf32>
    %c1_i32 = arith.constant 1 : i32
    %c64_i32_17 = arith.constant 64 : i32
    %19 = arith.muli %c1_i32, %c64_i32_17 : i32
    %20 = tpu.assume_multiple %19, 64 : i32
    %c0_i32_18 = arith.constant 0 : i32
    %c0_i32_19 = arith.constant 0 : i32
    %21 = tpu.memref_slice %arg5[%c0_i32, %c0_i32_18, %c0_i32_19] : memref<1x256x128xf32, #tpu.memory_space<vmem>> -> memref<1x256x128xf32, #tpu.memory_space<vmem>>
    %22 = tpu.memref_squeeze %21 : memref<1x256x128xf32, #tpu.memory_space<vmem>> -> memref<256x128xf32, #tpu.memory_space<vmem>>
    %23 = arith.index_cast %20 : i32 to index
    %c0_20 = arith.constant 0 : index
    %24 = vector.load %22[%23, %c0_20] : memref<256x128xf32, #tpu.memory_space<vmem>>, vector<64x128xf32>
    %cst_21 = arith.constant dense<0.000000e+00> : vector<128xf32>
    %25 = vector.multi_reduction <add>, %24, %cst_21 [0] : vector<64x128xf32> to vector<128xf32>
    %26 = vector.shape_cast %25 : vector<128xf32> to vector<1x128xf32>
    %27 = arith.addf %18, %26 : vector<1x128xf32>
    %c2_i32 = arith.constant 2 : i32
    %c64_i32_22 = arith.constant 64 : i32
    %28 = arith.muli %c2_i32, %c64_i32_22 : i32
    %29 = tpu.assume_multiple %28, 64 : i32
    %c0_i32_23 = arith.constant 0 : i32
    %c0_i32_24 = arith.constant 0 : i32
    %30 = tpu.memref_slice %arg5[%c0_i32, %c0_i32_23, %c0_i32_24] : memref<1x256x128xf32, #tpu.memory_space<vmem>> -> memref<1x256x128xf32, #tpu.memory_space<vmem>>
    %31 = tpu.memref_squeeze %30 : memref<1x256x128xf32, #tpu.memory_space<vmem>> -> memref<256x128xf32, #tpu.memory_space<vmem>>
    %32 = arith.index_cast %29 : i32 to index
    %c0_25 = arith.constant 0 : index
    %33 = vector.load %31[%32, %c0_25] : memref<256x128xf32, #tpu.memory_space<vmem>>, vector<64x128xf32>
    %cst_26 = arith.constant dense<0.000000e+00> : vector<128xf32>
    %34 = vector.multi_reduction <add>, %33, %cst_26 [0] : vector<64x128xf32> to vector<128xf32>
    %35 = vector.shape_cast %34 : vector<128xf32> to vector<1x128xf32>
    %36 = arith.addf %27, %35 : vector<1x128xf32>
    %c3_i32 = arith.constant 3 : i32
    %c64_i32_27 = arith.constant 64 : i32
    %37 = arith.muli %c3_i32, %c64_i32_27 : i32
    %38 = tpu.assume_multiple %37, 64 : i32
    %c0_i32_28 = arith.constant 0 : i32
    %c0_i32_29 = arith.constant 0 : i32
    %39 = tpu.memref_slice %arg5[%c0_i32, %c0_i32_28, %c0_i32_29] : memref<1x256x128xf32, #tpu.memory_space<vmem>> -> memref<1x256x128xf32, #tpu.memory_space<vmem>>
    %40 = tpu.memref_squeeze %39 : memref<1x256x128xf32, #tpu.memory_space<vmem>> -> memref<256x128xf32, #tpu.memory_space<vmem>>
    %41 = arith.index_cast %38 : i32 to index
    %c0_30 = arith.constant 0 : index
    %42 = vector.load %40[%41, %c0_30] : memref<256x128xf32, #tpu.memory_space<vmem>>, vector<64x128xf32>
    %cst_31 = arith.constant dense<0.000000e+00> : vector<128xf32>
    %43 = vector.multi_reduction <add>, %42, %cst_31 [0] : vector<64x128xf32> to vector<128xf32>
    %44 = vector.shape_cast %43 : vector<128xf32> to vector<1x128xf32>
    %45 = arith.addf %36, %44 : vector<1x128xf32>
    %c4_i32 = arith.constant 4 : i32
    %cst_32 = arith.constant 2.560000e+02 : f32
    %46 = vector.broadcast %cst_32 : f32 to vector<1x128xf32>
    %47 = arith.mulf %46, %6 : vector<1x128xf32>
    %48 = arith.addf %45, %47 : vector<1x128xf32>
    %49 = tpu.iota {dimensions = array<i32: 1>} : vector<1x128xi32>
    %c127_i32 = arith.constant 127 : i32
    %50 = tpu.dynamic_rotate %48 by %c127_i32 dim 1 : vector<1x128xf32>, i32 -> vector<1x128xf32>
    %c1_i32_33 = arith.constant 1 : i32
    %51 = tpu.dynamic_rotate %48 by %c1_i32_33 dim 1 : vector<1x128xf32>, i32 -> vector<1x128xf32>
    %c2_i32_34 = arith.constant 2 : i32
    %c0_i32_35 = arith.constant 0 : i32
    %52 = arith.cmpi eq, %c2_i32_34, %c0_i32_35 : i32
    %c1_i32_36 = arith.constant 1 : i32
    %53 = arith.select %52, %c1_i32_36, %c2_i32_34 : i32
    %54 = vector.broadcast %53 : i32 to vector<1x128xi32>
    %55 = arith.remsi %49, %54 : vector<1x128xi32>
    %c0_i32_37 = arith.constant 0 : i32
    %56 = vector.broadcast %c0_i32_37 : i32 to vector<1x128xi32>
    %57 = arith.cmpi ne, %55, %56 : vector<1x128xi32>
    %c0_i32_38 = arith.constant 0 : i32
    %58 = vector.broadcast %c0_i32_38 : i32 to vector<1x128xi32>
    %59 = arith.cmpi slt, %55, %58 : vector<1x128xi32>
    %c0_i32_39 = arith.constant 0 : i32
    %60 = arith.cmpi slt, %53, %c0_i32_39 : i32
    %61 = vector.broadcast %60 : i1 to vector<1x128xi1>
    %62 = vector.broadcast %61 : vector<1x128xi1> to vector<1x128xi1>
    %63 = arith.xori %59, %62 : vector<1x128xi1>
    %64 = arith.andi %63, %57 : vector<1x128xi1>
    %65 = vector.broadcast %53 : i32 to vector<1x128xi32>
    %66 = arith.addi %55, %65 : vector<1x128xi32>
    %67 = arith.select %64, %66, %55 : vector<1x128xi1>, vector<1x128xi32>
    %c1_i32_40 = arith.constant 1 : i32
    %68 = vector.broadcast %c1_i32_40 : i32 to vector<1x128xi32>
    %69 = arith.cmpi slt, %67, %68 : vector<1x128xi32>
    %70 = arith.select %69, %50, %51 : vector<1x128xi1>, vector<1x128xf32>
    %71 = arith.addf %48, %70 : vector<1x128xf32>
    %c126_i32 = arith.constant 126 : i32
    %72 = tpu.dynamic_rotate %71 by %c126_i32 dim 1 : vector<1x128xf32>, i32 -> vector<1x128xf32>
    %c2_i32_41 = arith.constant 2 : i32
    %73 = tpu.dynamic_rotate %71 by %c2_i32_41 dim 1 : vector<1x128xf32>, i32 -> vector<1x128xf32>
    %c4_i32_42 = arith.constant 4 : i32
    %c0_i32_43 = arith.constant 0 : i32
    %74 = arith.cmpi eq, %c4_i32_42, %c0_i32_43 : i32
    %c1_i32_44 = arith.constant 1 : i32
    %75 = arith.select %74, %c1_i32_44, %c4_i32_42 : i32
    %76 = vector.broadcast %75 : i32 to vector<1x128xi32>
    %77 = arith.remsi %49, %76 : vector<1x128xi32>
    %c0_i32_45 = arith.constant 0 : i32
    %78 = vector.broadcast %c0_i32_45 : i32 to vector<1x128xi32>
    %79 = arith.cmpi ne, %77, %78 : vector<1x128xi32>
    %c0_i32_46 = arith.constant 0 : i32
    %80 = vector.broadcast %c0_i32_46 : i32 to vector<1x128xi32>
    %81 = arith.cmpi slt, %77, %80 : vector<1x128xi32>
    %c0_i32_47 = arith.constant 0 : i32
    %82 = arith.cmpi slt, %75, %c0_i32_47 : i32
    %83 = vector.broadcast %82 : i1 to vector<1x128xi1>
    %84 = vector.broadcast %83 : vector<1x128xi1> to vector<1x128xi1>
    %85 = arith.xori %81, %84 : vector<1x128xi1>
    %86 = arith.andi %85, %79 : vector<1x128xi1>
    %87 = vector.broadcast %75 : i32 to vector<1x128xi32>
    %88 = arith.addi %77, %87 : vector<1x128xi32>
    %89 = arith.select %86, %88, %77 : vector<1x128xi1>, vector<1x128xi32>
    %c2_i32_48 = arith.constant 2 : i32
    %90 = vector.broadcast %c2_i32_48 : i32 to vector<1x128xi32>
    %91 = arith.cmpi slt, %89, %90 : vector<1x128xi32>
    %92 = arith.select %91, %72, %73 : vector<1x128xi1>, vector<1x128xf32>
    %93 = arith.addf %71, %92 : vector<1x128xf32>
    %cst_49 = arith.constant 9.765625E-4 : f32
    %94 = vector.broadcast %cst_49 : f32 to vector<1x128xf32>
    %95 = arith.mulf %93, %94 : vector<1x128xf32>
    %96 = arith.subf %6, %95 : vector<1x128xf32>
    %cst_50 = arith.constant 0.000000e+00 : f32
    %97 = vector.broadcast %cst_50 : f32 to vector<1x128xf32>
    %c0_i32_51 = arith.constant 0 : i32
    %c0_i32_52 = arith.constant 0 : i32
    %c64_i32_53 = arith.constant 64 : i32
    %98 = arith.muli %c0_i32_52, %c64_i32_53 : i32
    %99 = tpu.assume_multiple %98, 64 : i32
    %c0_i32_54 = arith.constant 0 : i32
    %c0_i32_55 = arith.constant 0 : i32
    %100 = tpu.memref_slice %arg5[%c0_i32_51, %c0_i32_54, %c0_i32_55] : memref<1x256x128xf32, #tpu.memory_space<vmem>> -> memref<1x256x128xf32, #tpu.memory_space<vmem>>
    %101 = tpu.memref_squeeze %100 : memref<1x256x128xf32, #tpu.memory_space<vmem>> -> memref<256x128xf32, #tpu.memory_space<vmem>>
    %102 = arith.index_cast %99 : i32 to index
    %c0_56 = arith.constant 0 : index
    %103 = vector.load %101[%102, %c0_56] : memref<256x128xf32, #tpu.memory_space<vmem>>, vector<64x128xf32>
    %104 = vector.broadcast %96 : vector<1x128xf32> to vector<64x128xf32>
    %105 = arith.addf %103, %104 : vector<64x128xf32>
    %106 = arith.mulf %105, %105 : vector<64x128xf32>
    %cst_57 = arith.constant dense<0.000000e+00> : vector<128xf32>
    %107 = vector.multi_reduction <add>, %106, %cst_57 [0] : vector<64x128xf32> to vector<128xf32>
    %108 = vector.shape_cast %107 : vector<128xf32> to vector<1x128xf32>
    %109 = arith.addf %97, %108 : vector<1x128xf32>
    %c1_i32_58 = arith.constant 1 : i32
    %c64_i32_59 = arith.constant 64 : i32
    %110 = arith.muli %c1_i32_58, %c64_i32_59 : i32
    %111 = tpu.assume_multiple %110, 64 : i32
    %c0_i32_60 = arith.constant 0 : i32
    %c0_i32_61 = arith.constant 0 : i32
    %112 = tpu.memref_slice %arg5[%c0_i32_51, %c0_i32_60, %c0_i32_61] : memref<1x256x128xf32, #tpu.memory_space<vmem>> -> memref<1x256x128xf32, #tpu.memory_space<vmem>>
    %113 = tpu.memref_squeeze %112 : memref<1x256x128xf32, #tpu.memory_space<vmem>> -> memref<256x128xf32, #tpu.memory_space<vmem>>
    %114 = arith.index_cast %111 : i32 to index
    %c0_62 = arith.constant 0 : index
    %115 = vector.load %113[%114, %c0_62] : memref<256x128xf32, #tpu.memory_space<vmem>>, vector<64x128xf32>
    %116 = vector.broadcast %96 : vector<1x128xf32> to vector<64x128xf32>
    %117 = arith.addf %115, %116 : vector<64x128xf32>
    %118 = arith.mulf %117, %117 : vector<64x128xf32>
    %cst_63 = arith.constant dense<0.000000e+00> : vector<128xf32>
    %119 = vector.multi_reduction <add>, %118, %cst_63 [0] : vector<64x128xf32> to vector<128xf32>
    %120 = vector.shape_cast %119 : vector<128xf32> to vector<1x128xf32>
    %121 = arith.addf %109, %120 : vector<1x128xf32>
    %c2_i32_64 = arith.constant 2 : i32
    %c64_i32_65 = arith.constant 64 : i32
    %122 = arith.muli %c2_i32_64, %c64_i32_65 : i32
    %123 = tpu.assume_multiple %122, 64 : i32
    %c0_i32_66 = arith.constant 0 : i32
    %c0_i32_67 = arith.constant 0 : i32
    %124 = tpu.memref_slice %arg5[%c0_i32_51, %c0_i32_66, %c0_i32_67] : memref<1x256x128xf32, #tpu.memory_space<vmem>> -> memref<1x256x128xf32, #tpu.memory_space<vmem>>
    %125 = tpu.memref_squeeze %124 : memref<1x256x128xf32, #tpu.memory_space<vmem>> -> memref<256x128xf32, #tpu.memory_space<vmem>>
    %126 = arith.index_cast %123 : i32 to index
    %c0_68 = arith.constant 0 : index
    %127 = vector.load %125[%126, %c0_68] : memref<256x128xf32, #tpu.memory_space<vmem>>, vector<64x128xf32>
    %128 = vector.broadcast %96 : vector<1x128xf32> to vector<64x128xf32>
    %129 = arith.addf %127, %128 : vector<64x128xf32>
    %130 = arith.mulf %129, %129 : vector<64x128xf32>
    %cst_69 = arith.constant dense<0.000000e+00> : vector<128xf32>
    %131 = vector.multi_reduction <add>, %130, %cst_69 [0] : vector<64x128xf32> to vector<128xf32>
    %132 = vector.shape_cast %131 : vector<128xf32> to vector<1x128xf32>
    %133 = arith.addf %121, %132 : vector<1x128xf32>
    %c3_i32_70 = arith.constant 3 : i32
    %c64_i32_71 = arith.constant 64 : i32
    %134 = arith.muli %c3_i32_70, %c64_i32_71 : i32
    %135 = tpu.assume_multiple %134, 64 : i32
    %c0_i32_72 = arith.constant 0 : i32
    %c0_i32_73 = arith.constant 0 : i32
    %136 = tpu.memref_slice %arg5[%c0_i32_51, %c0_i32_72, %c0_i32_73] : memref<1x256x128xf32, #tpu.memory_space<vmem>> -> memref<1x256x128xf32, #tpu.memory_space<vmem>>
    %137 = tpu.memref_squeeze %136 : memref<1x256x128xf32, #tpu.memory_space<vmem>> -> memref<256x128xf32, #tpu.memory_space<vmem>>
    %138 = arith.index_cast %135 : i32 to index
    %c0_74 = arith.constant 0 : index
    %139 = vector.load %137[%138, %c0_74] : memref<256x128xf32, #tpu.memory_space<vmem>>, vector<64x128xf32>
    %140 = vector.broadcast %96 : vector<1x128xf32> to vector<64x128xf32>
    %141 = arith.addf %139, %140 : vector<64x128xf32>
    %142 = arith.mulf %141, %141 : vector<64x128xf32>
    %cst_75 = arith.constant dense<0.000000e+00> : vector<128xf32>
    %143 = vector.multi_reduction <add>, %142, %cst_75 [0] : vector<64x128xf32> to vector<128xf32>
    %144 = vector.shape_cast %143 : vector<128xf32> to vector<1x128xf32>
    %145 = arith.addf %133, %144 : vector<1x128xf32>
    %c4_i32_76 = arith.constant 4 : i32
    %146 = tpu.iota {dimensions = array<i32: 1>} : vector<1x128xi32>
    %c127_i32_77 = arith.constant 127 : i32
    %147 = tpu.dynamic_rotate %145 by %c127_i32_77 dim 1 : vector<1x128xf32>, i32 -> vector<1x128xf32>
    %c1_i32_78 = arith.constant 1 : i32
    %148 = tpu.dynamic_rotate %145 by %c1_i32_78 dim 1 : vector<1x128xf32>, i32 -> vector<1x128xf32>
    %c2_i32_79 = arith.constant 2 : i32
    %c0_i32_80 = arith.constant 0 : i32
    %149 = arith.cmpi eq, %c2_i32_79, %c0_i32_80 : i32
    %c1_i32_81 = arith.constant 1 : i32
    %150 = arith.select %149, %c1_i32_81, %c2_i32_79 : i32
    %151 = vector.broadcast %150 : i32 to vector<1x128xi32>
    %152 = arith.remsi %146, %151 : vector<1x128xi32>
    %c0_i32_82 = arith.constant 0 : i32
    %153 = vector.broadcast %c0_i32_82 : i32 to vector<1x128xi32>
    %154 = arith.cmpi ne, %152, %153 : vector<1x128xi32>
    %c0_i32_83 = arith.constant 0 : i32
    %155 = vector.broadcast %c0_i32_83 : i32 to vector<1x128xi32>
    %156 = arith.cmpi slt, %152, %155 : vector<1x128xi32>
    %c0_i32_84 = arith.constant 0 : i32
    %157 = arith.cmpi slt, %150, %c0_i32_84 : i32
    %158 = vector.broadcast %157 : i1 to vector<1x128xi1>
    %159 = vector.broadcast %158 : vector<1x128xi1> to vector<1x128xi1>
    %160 = arith.xori %156, %159 : vector<1x128xi1>
    %161 = arith.andi %160, %154 : vector<1x128xi1>
    %162 = vector.broadcast %150 : i32 to vector<1x128xi32>
    %163 = arith.addi %152, %162 : vector<1x128xi32>
    %164 = arith.select %161, %163, %152 : vector<1x128xi1>, vector<1x128xi32>
    %c1_i32_85 = arith.constant 1 : i32
    %165 = vector.broadcast %c1_i32_85 : i32 to vector<1x128xi32>
    %166 = arith.cmpi slt, %164, %165 : vector<1x128xi32>
    %167 = arith.select %166, %147, %148 : vector<1x128xi1>, vector<1x128xf32>
    %168 = arith.addf %145, %167 : vector<1x128xf32>
    %c126_i32_86 = arith.constant 126 : i32
    %169 = tpu.dynamic_rotate %168 by %c126_i32_86 dim 1 : vector<1x128xf32>, i32 -> vector<1x128xf32>
    %c2_i32_87 = arith.constant 2 : i32
    %170 = tpu.dynamic_rotate %168 by %c2_i32_87 dim 1 : vector<1x128xf32>, i32 -> vector<1x128xf32>
    %c4_i32_88 = arith.constant 4 : i32
    %c0_i32_89 = arith.constant 0 : i32
    %171 = arith.cmpi eq, %c4_i32_88, %c0_i32_89 : i32
    %c1_i32_90 = arith.constant 1 : i32
    %172 = arith.select %171, %c1_i32_90, %c4_i32_88 : i32
    %173 = vector.broadcast %172 : i32 to vector<1x128xi32>
    %174 = arith.remsi %146, %173 : vector<1x128xi32>
    %c0_i32_91 = arith.constant 0 : i32
    %175 = vector.broadcast %c0_i32_91 : i32 to vector<1x128xi32>
    %176 = arith.cmpi ne, %174, %175 : vector<1x128xi32>
    %c0_i32_92 = arith.constant 0 : i32
    %177 = vector.broadcast %c0_i32_92 : i32 to vector<1x128xi32>
    %178 = arith.cmpi slt, %174, %177 : vector<1x128xi32>
    %c0_i32_93 = arith.constant 0 : i32
    %179 = arith.cmpi slt, %172, %c0_i32_93 : i32
    %180 = vector.broadcast %179 : i1 to vector<1x128xi1>
    %181 = vector.broadcast %180 : vector<1x128xi1> to vector<1x128xi1>
    %182 = arith.xori %178, %181 : vector<1x128xi1>
    %183 = arith.andi %182, %176 : vector<1x128xi1>
    %184 = vector.broadcast %172 : i32 to vector<1x128xi32>
    %185 = arith.addi %174, %184 : vector<1x128xi32>
    %186 = arith.select %183, %185, %174 : vector<1x128xi1>, vector<1x128xi32>
    %c2_i32_94 = arith.constant 2 : i32
    %187 = vector.broadcast %c2_i32_94 : i32 to vector<1x128xi32>
    %188 = arith.cmpi slt, %186, %187 : vector<1x128xi32>
    %189 = arith.select %188, %169, %170 : vector<1x128xi1>, vector<1x128xf32>
    %190 = arith.addf %168, %189 : vector<1x128xf32>
    %cst_95 = arith.constant 9.765625E-4 : f32
    %191 = vector.broadcast %cst_95 : f32 to vector<1x128xf32>
    %192 = arith.mulf %190, %191 : vector<1x128xf32>
    %cst_96 = arith.constant 9.99999974E-6 : f32
    %193 = vector.broadcast %cst_96 : f32 to vector<1x128xf32>
    %194 = arith.addf %192, %193 : vector<1x128xf32>
    %195 = math.rsqrt %194 : vector<1x128xf32>
    %196 = arith.mulf %195, %7 : vector<1x128xf32>
    %197 = arith.mulf %96, %196 : vector<1x128xf32>
    %198 = arith.addf %197, %8 : vector<1x128xf32>
    %c0_i32_97 = arith.constant 0 : i32
    %c0_i32_98 = arith.constant 0 : i32
    %c0_i32_99 = arith.constant 0 : i32
    %c64_i32_100 = arith.constant 64 : i32
    %199 = arith.muli %c0_i32_99, %c64_i32_100 : i32
    %200 = tpu.assume_multiple %199, 64 : i32
    %c0_i32_101 = arith.constant 0 : i32
    %c0_i32_102 = arith.constant 0 : i32
    %201 = tpu.memref_slice %arg5[%c0_i32_97, %c0_i32_101, %c0_i32_102] : memref<1x256x128xf32, #tpu.memory_space<vmem>> -> memref<1x256x128xf32, #tpu.memory_space<vmem>>
    %202 = tpu.memref_squeeze %201 : memref<1x256x128xf32, #tpu.memory_space<vmem>> -> memref<256x128xf32, #tpu.memory_space<vmem>>
    %203 = arith.index_cast %200 : i32 to index
    %c0_103 = arith.constant 0 : index
    %204 = vector.load %202[%203, %c0_103] : memref<256x128xf32, #tpu.memory_space<vmem>>, vector<64x128xf32>
    %205 = vector.broadcast %196 : vector<1x128xf32> to vector<64x128xf32>
    %206 = arith.mulf %204, %205 : vector<64x128xf32>
    %207 = vector.broadcast %198 : vector<1x128xf32> to vector<64x128xf32>
    %208 = arith.addf %206, %207 : vector<64x128xf32>
    %cst_104 = arith.constant 0.000000e+00 : f32
    %209 = vector.broadcast %cst_104 : f32 to vector<64x128xf32>
    %210 = arith.cmpf ogt, %208, %209 : vector<64x128xf32>
    %cst_105 = arith.constant 0.000000e+00 : f32
    %211 = vector.broadcast %cst_105 : f32 to vector<64x128xf32>
    %212 = arith.minimumf %208, %211 : vector<64x128xf32>
    %213 = math.exp %212 : vector<64x128xf32>
    %cst_106 = arith.constant 1.000000e+00 : f32
    %214 = vector.broadcast %cst_106 : f32 to vector<64x128xf32>
    %215 = arith.subf %213, %214 : vector<64x128xf32>
    %216 = arith.select %210, %208, %215 : vector<64x128xi1>, vector<64x128xf32>
    %217 = vector.extract_strided_slice %216 {offsets = [0, 0], sizes = [64, 32], strides = [1, 1]} : vector<64x128xf32> to vector<64x32xf32>
    %218 = arith.truncf %217 : vector<64x32xf32> to vector<64x32xbf16>
    %c0_i32_107 = arith.constant 0 : i32
    %c0_i32_108 = arith.constant 0 : i32
    %219 = tpu.memref_slice %arg4[%c0_i32_98, %c0_i32_107, %c0_i32_108] : memref<1x256x32xbf16, #tpu.memory_space<vmem>> -> memref<1x256x32xbf16, #tpu.memory_space<vmem>>
    %220 = tpu.memref_squeeze %219 : memref<1x256x32xbf16, #tpu.memory_space<vmem>> -> memref<256x32xbf16, #tpu.memory_space<vmem>>
    %221 = arith.index_cast %200 : i32 to index
    %c0_109 = arith.constant 0 : index
    %222 = vector.load %220[%221, %c0_109] : memref<256x32xbf16, #tpu.memory_space<vmem>>, vector<64x32xbf16>
    tpu.vector_store %220[%221, %c0_109], %218 {strides = array<i32>} : memref<256x32xbf16, #tpu.memory_space<vmem>>, vector<64x32xbf16>,
    %c1_i32_110 = arith.constant 1 : i32
    %c64_i32_111 = arith.constant 64 : i32
    %223 = arith.muli %c1_i32_110, %c64_i32_111 : i32
    %224 = tpu.assume_multiple %223, 64 : i32
    %c0_i32_112 = arith.constant 0 : i32
    %c0_i32_113 = arith.constant 0 : i32
    %225 = tpu.memref_slice %arg5[%c0_i32_97, %c0_i32_112, %c0_i32_113] : memref<1x256x128xf32, #tpu.memory_space<vmem>> -> memref<1x256x128xf32, #tpu.memory_space<vmem>>
    %226 = tpu.memref_squeeze %225 : memref<1x256x128xf32, #tpu.memory_space<vmem>> -> memref<256x128xf32, #tpu.memory_space<vmem>>
    %227 = arith.index_cast %224 : i32 to index
    %c0_114 = arith.constant 0 : index
    %228 = vector.load %226[%227, %c0_114] : memref<256x128xf32, #tpu.memory_space<vmem>>, vector<64x128xf32>
    %229 = vector.broadcast %196 : vector<1x128xf32> to vector<64x128xf32>
    %230 = arith.mulf %228, %229 : vector<64x128xf32>
    %231 = vector.broadcast %198 : vector<1x128xf32> to vector<64x128xf32>
    %232 = arith.addf %230, %231 : vector<64x128xf32>
    %cst_115 = arith.constant 0.000000e+00 : f32
    %233 = vector.broadcast %cst_115 : f32 to vector<64x128xf32>
    %234 = arith.cmpf ogt, %232, %233 : vector<64x128xf32>
    %cst_116 = arith.constant 0.000000e+00 : f32
    %235 = vector.broadcast %cst_116 : f32 to vector<64x128xf32>
    %236 = arith.minimumf %232, %235 : vector<64x128xf32>
    %237 = math.exp %236 : vector<64x128xf32>
    %cst_117 = arith.constant 1.000000e+00 : f32
    %238 = vector.broadcast %cst_117 : f32 to vector<64x128xf32>
    %239 = arith.subf %237, %238 : vector<64x128xf32>
    %240 = arith.select %234, %232, %239 : vector<64x128xi1>, vector<64x128xf32>
    %241 = vector.extract_strided_slice %240 {offsets = [0, 0], sizes = [64, 32], strides = [1, 1]} : vector<64x128xf32> to vector<64x32xf32>
    %242 = arith.truncf %241 : vector<64x32xf32> to vector<64x32xbf16>
    %c0_i32_118 = arith.constant 0 : i32
    %c0_i32_119 = arith.constant 0 : i32
    %243 = tpu.memref_slice %arg4[%c0_i32_98, %c0_i32_118, %c0_i32_119] : memref<1x256x32xbf16, #tpu.memory_space<vmem>> -> memref<1x256x32xbf16, #tpu.memory_space<vmem>>
    %244 = tpu.memref_squeeze %243 : memref<1x256x32xbf16, #tpu.memory_space<vmem>> -> memref<256x32xbf16, #tpu.memory_space<vmem>>
    %245 = arith.index_cast %224 : i32 to index
    %c0_120 = arith.constant 0 : index
    %246 = vector.load %244[%245, %c0_120] : memref<256x32xbf16, #tpu.memory_space<vmem>>, vector<64x32xbf16>
    tpu.vector_store %244[%245, %c0_120], %242 {strides = array<i32>} : memref<256x32xbf16, #tpu.memory_space<vmem>>, vector<64x32xbf16>,
    %c2_i32_121 = arith.constant 2 : i32
    %c64_i32_122 = arith.constant 64 : i32
    %247 = arith.muli %c2_i32_121, %c64_i32_122 : i32
    %248 = tpu.assume_multiple %247, 64 : i32
    %c0_i32_123 = arith.constant 0 : i32
    %c0_i32_124 = arith.constant 0 : i32
    %249 = tpu.memref_slice %arg5[%c0_i32_97, %c0_i32_123, %c0_i32_124] : memref<1x256x128xf32, #tpu.memory_space<vmem>> -> memref<1x256x128xf32, #tpu.memory_space<vmem>>
    %250 = tpu.memref_squeeze %249 : memref<1x256x128xf32, #tpu.memory_space<vmem>> -> memref<256x128xf32, #tpu.memory_space<vmem>>
    %251 = arith.index_cast %248 : i32 to index
    %c0_125 = arith.constant 0 : index
    %252 = vector.load %250[%251, %c0_125] : memref<256x128xf32, #tpu.memory_space<vmem>>, vector<64x128xf32>
    %253 = vector.broadcast %196 : vector<1x128xf32> to vector<64x128xf32>
    %254 = arith.mulf %252, %253 : vector<64x128xf32>
    %255 = vector.broadcast %198 : vector<1x128xf32> to vector<64x128xf32>
    %256 = arith.addf %254, %255 : vector<64x128xf32>
    %cst_126 = arith.constant 0.000000e+00 : f32
    %257 = vector.broadcast %cst_126 : f32 to vector<64x128xf32>
    %258 = arith.cmpf ogt, %256, %257 : vector<64x128xf32>
    %cst_127 = arith.constant 0.000000e+00 : f32
    %259 = vector.broadcast %cst_127 : f32 to vector<64x128xf32>
    %260 = arith.minimumf %256, %259 : vector<64x128xf32>
    %261 = math.exp %260 : vector<64x128xf32>
    %cst_128 = arith.constant 1.000000e+00 : f32
    %262 = vector.broadcast %cst_128 : f32 to vector<64x128xf32>
    %263 = arith.subf %261, %262 : vector<64x128xf32>
    %264 = arith.select %258, %256, %263 : vector<64x128xi1>, vector<64x128xf32>
    %265 = vector.extract_strided_slice %264 {offsets = [0, 0], sizes = [64, 32], strides = [1, 1]} : vector<64x128xf32> to vector<64x32xf32>
    %266 = arith.truncf %265 : vector<64x32xf32> to vector<64x32xbf16>
    %c0_i32_129 = arith.constant 0 : i32
    %c0_i32_130 = arith.constant 0 : i32
    %267 = tpu.memref_slice %arg4[%c0_i32_98, %c0_i32_129, %c0_i32_130] : memref<1x256x32xbf16, #tpu.memory_space<vmem>> -> memref<1x256x32xbf16, #tpu.memory_space<vmem>>
    %268 = tpu.memref_squeeze %267 : memref<1x256x32xbf16, #tpu.memory_space<vmem>> -> memref<256x32xbf16, #tpu.memory_space<vmem>>
    %269 = arith.index_cast %248 : i32 to index
    %c0_131 = arith.constant 0 : index
    %270 = vector.load %268[%269, %c0_131] : memref<256x32xbf16, #tpu.memory_space<vmem>>, vector<64x32xbf16>
    tpu.vector_store %268[%269, %c0_131], %266 {strides = array<i32>} : memref<256x32xbf16, #tpu.memory_space<vmem>>, vector<64x32xbf16>,
    %c3_i32_132 = arith.constant 3 : i32
    %c64_i32_133 = arith.constant 64 : i32
    %271 = arith.muli %c3_i32_132, %c64_i32_133 : i32
    %272 = tpu.assume_multiple %271, 64 : i32
    %c0_i32_134 = arith.constant 0 : i32
    %c0_i32_135 = arith.constant 0 : i32
    %273 = tpu.memref_slice %arg5[%c0_i32_97, %c0_i32_134, %c0_i32_135] : memref<1x256x128xf32, #tpu.memory_space<vmem>> -> memref<1x256x128xf32, #tpu.memory_space<vmem>>
    %274 = tpu.memref_squeeze %273 : memref<1x256x128xf32, #tpu.memory_space<vmem>> -> memref<256x128xf32, #tpu.memory_space<vmem>>
    %275 = arith.index_cast %272 : i32 to index
    %c0_136 = arith.constant 0 : index
    %276 = vector.load %274[%275, %c0_136] : memref<256x128xf32, #tpu.memory_space<vmem>>, vector<64x128xf32>
    %277 = vector.broadcast %196 : vector<1x128xf32> to vector<64x128xf32>
    %278 = arith.mulf %276, %277 : vector<64x128xf32>
    %279 = vector.broadcast %198 : vector<1x128xf32> to vector<64x128xf32>
    %280 = arith.addf %278, %279 : vector<64x128xf32>
    %cst_137 = arith.constant 0.000000e+00 : f32
    %281 = vector.broadcast %cst_137 : f32 to vector<64x128xf32>
    %282 = arith.cmpf ogt, %280, %281 : vector<64x128xf32>
    %cst_138 = arith.constant 0.000000e+00 : f32
    %283 = vector.broadcast %cst_138 : f32 to vector<64x128xf32>
    %284 = arith.minimumf %280, %283 : vector<64x128xf32>
    %285 = math.exp %284 : vector<64x128xf32>
    %cst_139 = arith.constant 1.000000e+00 : f32
    %286 = vector.broadcast %cst_139 : f32 to vector<64x128xf32>
    %287 = arith.subf %285, %286 : vector<64x128xf32>
    %288 = arith.select %282, %280, %287 : vector<64x128xi1>, vector<64x128xf32>
    %289 = vector.extract_strided_slice %288 {offsets = [0, 0], sizes = [64, 32], strides = [1, 1]} : vector<64x128xf32> to vector<64x32xf32>
    %290 = arith.truncf %289 : vector<64x32xf32> to vector<64x32xbf16>
    %c0_i32_140 = arith.constant 0 : i32
    %c0_i32_141 = arith.constant 0 : i32
    %291 = tpu.memref_slice %arg4[%c0_i32_98, %c0_i32_140, %c0_i32_141] : memref<1x256x32xbf16, #tpu.memory_space<vmem>> -> memref<1x256x32xbf16, #tpu.memory_space<vmem>>
    %292 = tpu.memref_squeeze %291 : memref<1x256x32xbf16, #tpu.memory_space<vmem>> -> memref<256x32xbf16, #tpu.memory_space<vmem>>
    %293 = arith.index_cast %272 : i32 to index
    %c0_142 = arith.constant 0 : index
    %294 = vector.load %292[%293, %c0_142] : memref<256x32xbf16, #tpu.memory_space<vmem>>, vector<64x32xbf16>
    tpu.vector_store %292[%293, %c0_142], %290 {strides = array<i32>} : memref<256x32xbf16, #tpu.memory_space<vmem>>, vector<64x32xbf16>,
    %c4_i32_143 = arith.constant 4 : i32
    return
  }
  func.func @transform_0(%arg0: i32) -> (i32, i32, i32) {
    %c0_i32 = arith.constant 0 : i32
    %c0_i32_0 = arith.constant 0 : i32
    %c0_i32_1 = arith.constant 0 : i32
    return %arg0, %c0_i32, %c0_i32_0 : i32, i32, i32
  }
  func.func @transform_1(%arg0: i32) -> (i32, i32) {
    %c0_i32 = arith.constant 0 : i32
    %c0_i32_0 = arith.constant 0 : i32
    %c0_i32_1 = arith.constant 0 : i32
    return %c0_i32, %c0_i32_0 : i32, i32
  }
  func.func @transform_2(%arg0: i32) -> (i32, i32) {
    %c0_i32 = arith.constant 0 : i32
    %c0_i32_0 = arith.constant 0 : i32
    %c0_i32_1 = arith.constant 0 : i32
    return %c0_i32, %c0_i32_0 : i32, i32
  }
  func.func @transform_3(%arg0: i32) -> (i32, i32, i32) {
    %c0_i32 = arith.constant 0 : i32
    %c0_i32_0 = arith.constant 0 : i32
    %c0_i32_1 = arith.constant 0 : i32
    return %arg0, %c0_i32, %c0_i32_0 : i32, i32, i32
  }
}

</mosaic_0001>

<bundles_post_ra>
// kernel: tpu_custom_call.1
= control target key start
LH: loop header
LB: loop body
LE: loop exit
PB: predicated region body
PF: predicated region fallthrough
CT: control target
= control target key end

     0   :  { %s1699_s12 = smov 0   ;;  %s2340_s0 = inlined_call_operand.vmem [shape: bf16[2,256,36], index: 0, kind: input, shape index: {}]   ;;  %s2341_s1 = inlined_call_operand.vmem [shape: bf16[36,128], index: 1, kind: input, shape index: {}]   ;;  %s2342_s2 = inlined_call_operand.vmem [shape: f32[8,128], index: 2, kind: input, shape index: {}]   ;;  %s2343_s3 = inlined_call_operand.vmem [shape: bf16[2,256,32], index: 3, kind: output, shape index: {}]  }
   0x1 LB: > { %s1337_s13 = sadd.s32 4294967295, %s1673_s12   ;;  %p1341_p0 = scmp.ge.s32.totalorder %s1673_s12, 1  ;;  %s1673_s12 = sphi %s1699_s12, %s13_s12  }
   0x2   : > { %p137_p1 = scmp.lt.s32.totalorder %s1673_s12, 3 }
   0x4   : > { %p138_p2 = pnand %p1341_p0, %p137_p1 }
   0x6   : > { %141 = sbr.rel (%p138_p2) target bundleno = 920 (0x398), region = 32 }
   0xd   : > { %v1582_v0 = vld [vmem:[%s2341_s1] sm:$0xff]   ;;  %v1583_v1 = vld [vmem:[%s2341_s1 + $0x8] sm:$0xff]   ;;  %p161_p3 = scmp.lt.s32.totalorder %s1337_s13, 1  ;;  %v1584_v2 = vld [vmem:[%s2341_s1 + $0x10] ss:$0 sps:$4 sm:$0x33]  }
   0xe   : > { %1524 = vmatprep.subr.bf16.mxu0 %v1582_v0  ;;  %1562 = vmatprep.subr.bf16.mxu1 %v1582_v0  ;;  %vm353_vm0 = vcmask 1041408   ;;  %vm304_vm1 = vcmask 293888   ;;  %s1675_s26 = smov 127   ;;  %s1676_s27 = smov 1   ;;  %vm934_vm4 = vcmask 257024  }
   0xf   : > { %1525 = vmatpush3.bf16.msra.mxu0 %v1582_v0  ;;  %1565 = vmatpush3.bf16.msra.mxu1 %v1582_v0  ;;  %s2409_s13 = smov (!%p161_p3, %s1337_s13), 1  ;;  %v355_v4 = vsel %vm353_vm0, %v1584_v2, 0  ;;  %s1677_s28 = smov 126  }
  0x10   : > { %1526 = vmatprep.subr.bf16.mxu0 %v1583_v1  ;;  %1563 = vmatprep.subr.bf16.mxu1 %v1583_v1  ;;  %s1471_s20 = sshll.u32 %s2409_s13, 7  ;;  %s1678_s29 = smov 2  }
  0x11   : > { %s1724_s23 = scalar_lea.vmem %s2340_s0, %s1471_s20  ;;  %s2075_s9 = scalar_lea.vmem %s2343_s3, %s1471_s20 }
  0x12   : > { %v1585_v3 = vld [vmem:[%s1724_s23] sm:$0xff]   ;;  %v1587_v6 = vld [vmem:[%s1724_s23 + $0x8] sm:$0xff]   ;;  %v1589_v8 = vld [vmem:[%s1724_s23 + $0x10] sm:$0xff]  }
  0x13   : > { %1527 = vmatpush3.bf16.msra.mxu0 %v1583_v1  ;;  %1566 = vmatpush3.bf16.msra.mxu1 %v1583_v1  ;;  %v1586_v5 = vld [vmem:[%s1724_s23 + $0x40] sm:$0xff]   ;;  %v1588_v7 = vld [vmem:[%s1724_s23 + $0x48] sm:$0xff]   ;;  %v1590_v9 = vld [vmem:[%s1724_s23 + $0x50] sm:$0xff]  }
  0x14   : > { %1568 = vmatprep.subr.msk.bf16.mxu0 %vm353_vm0, %v1584_v2  ;;  %1569 = vmatprep.subr.msk.bf16.mxu1 %vm353_vm0, %v1584_v2  ;;  %v1591_v10 = vld [vmem:[%s1724_s23 + $0x18] sm:$0xff]   ;;  %v1593_v12 = vld [vmem:[%s1724_s23 + $0x20] sm:$0xff]   ;;  %v1595_v14 = vld [vmem:[%s1724_s23 + $0x28] sm:$0xff]  }
  0x15   : > { %1530 = vmatprep.mubr.msk.bf16.mxu0 %vm304_vm1, %v1585_v3  ;;  %1546 = vmatprep.mubr.msk.bf16.mxu1 %vm304_vm1, %v1586_v5  ;;  %v1592_v11 = vld [vmem:[%s1724_s23 + $0x58] sm:$0xff]   ;;  %v1594_v13 = vld [vmem:[%s1724_s23 + $0x60] sm:$0xff]   ;;  %v1596_v15 = vld [vmem:[%s1724_s23 + $0x68] sm:$0xff]  }
  0x16   : > { %v1597_v16 = vld [vmem:[%s1724_s23 + $0x30] sm:$0xff]   ;;  %v1599_v18 = vld [vmem:[%s1724_s23 + $0x38] sm:$0xff]  }
  0x17   : > { %1529 = vmatpush3.bf16.msra.mxu0 %v355_v4  ;;  %1567 = vmatpush3.bf16.msra.mxu1 %v355_v4  ;;  %v1598_v17 = vld [vmem:[%s1724_s23 + $0x70] sm:$0xff]   ;;  %v1600_v19 = vld [vmem:[%s1724_s23 + $0x78] sm:$0xff]  }
  0x1a   : > { %1531 = vmatmul.mubr.msk.bf16.vlgmr.msra.gmra.mrb[0].mxu0 %vm304_vm1, %v1587_v6  ;;  %1547 = vmatmul.mubr.msk.bf16.vlgmr.msra.gmra.mrb[0].mxu1 %vm304_vm1, %v1588_v7 }
  0x1b   : > { %1534 = vmatprep.mubr.msk.bf16.mxu0 %vm304_vm1, %v1589_v8  ;;  %1550 = vmatprep.mubr.msk.bf16.mxu1 %vm304_vm1, %v1590_v9 }
  0x22   : > { %1535 = vmatmul.mubr.msk.bf16.gmra.mrb[4].mxu0 %vm304_vm1, %v1591_v10  ;;  %1551 = vmatmul.mubr.msk.bf16.gmra.mrb[4].mxu1 %vm304_vm1, %v1592_v11 }
  0x23   : > { %1538 = vmatprep.mubr.msk.bf16.mxu0 %vm304_vm1, %v1593_v12  ;;  %1554 = vmatprep.mubr.msk.bf16.mxu1 %vm304_vm1, %v1594_v13 }
  0x2a   : > { %1539 = vmatmul.mubr.msk.bf16.gmra.mrb[8].mxu0 %vm304_vm1, %v1595_v14  ;;  %1555 = vmatmul.mubr.msk.bf16.gmra.mrb[8].mxu1 %vm304_vm1, %v1596_v15 }
  0x2b   : > { %1542 = vmatprep.mubr.msk.bf16.mxu0 %vm304_vm1, %v1597_v16  ;;  %1558 = vmatprep.mubr.msk.bf16.mxu1 %vm304_vm1, %v1598_v17 }
  0x32   : > { %1543 = vmatmul.mubr.msk.bf16.gmra.mrb[12].mxu0 %vm304_vm1, %v1599_v18  ;;  %1559 = vmatmul.mubr.msk.bf16.gmra.mrb[12].mxu1 %vm304_vm1, %v1600_v19 }
  0xed   : > { %v1758_v20 = vpop.f32.mrb[0].mxu0  ;;  %v1760_v21 = vpop.f32.mrb[0].mxu1 }
  0xee   : > { %2364 = vst [vmem:[#allocation3_spill] sm:$0xff] %v1760_v21  ;;  %v1762_v22 = vpop.f32.mrb[1].mxu0  ;;  %v1764_v23 = vpop.f32.mrb[1].mxu1 }
  0xef   : > { %2365 = vst [vmem:[#allocation4_spill] sm:$0xff] %v1764_v23  ;;  %v1766_v24 = vpop.f32.mrb[2].mxu0  ;;  %v1768_v25 = vpop.f32.mrb[2].mxu1 }
  0xf0   : > { %2366 = vst [vmem:[#allocation5_spill] sm:$0xff] %v1768_v25  ;;  %v1770_v26 = vpop.f32.mrb[3].mxu0  ;;  %v1772_v27 = vpop.f32.mrb[3].mxu1 }
  0xf1   : > { %2367 = vst [vmem:[#allocation6_spill] sm:$0xff] %v1772_v27  ;;  %v561_v28 = vadd.f32 %v1770_v26, %v1762_v22  ;;  %v607_v29 = vadd.f32 %v1772_v27, %v1764_v23 }
  0xf3   : > { %v562_v30 = vadd.f32 %v1758_v20, %v561_v28  ;;  %v608_v31 = vadd.f32 %v1760_v21, %v607_v29 }
  0xf5   : > { %v1780_v32 = vpop.f32.mrb[4].mxu0  ;;  %v1782_v33 = vpop.f32.mrb[4].mxu1  ;;  %v563_v34 = vadd.f32 %v1766_v24, %v562_v30  ;;  %v609_v35 = vadd.f32 %v1768_v25, %v608_v31 }
  0xf6   : > { %2368 = vst [vmem:[#allocation7_spill] sm:$0xff] %v1782_v33  ;;  %v1786_v36 = vpop.f32.mrb[5].mxu0  ;;  %v1788_v37 = vpop.f32.mrb[5].mxu1 }
  0xf7   : > { %2369 = vst [vmem:[#allocation8_spill] sm:$0xff] %v1788_v37  ;;  %v564_v38 = vadd.f32 %v563_v34, %v1786_v36  ;;  %v610_v39 = vadd.f32 %v609_v35, %v1788_v37  ;;  %v1792_v40 = vpop.f32.mrb[6].mxu0  ;;  %v1794_v41 = vpop.f32.mrb[6].mxu1 }
  0xf8   : > { %2370 = vst [vmem:[#allocation9_spill] sm:$0xff] %v1794_v41  ;;  %v1796_v42 = vpop.f32.mrb[7].mxu0  ;;  %v1798_v43 = vpop.f32.mrb[7].mxu1 }
  0xf9   : > { %2371 = vst [vmem:[#allocation10_spill] sm:$0xff] %v1798_v43  ;;  %v565_v44 = vadd.f32 %v564_v38, %v1796_v42  ;;  %v611_v45 = vadd.f32 %v610_v39, %v1798_v43 }
  0xfb   : > { %v566_v46 = vadd.f32 %v1780_v32, %v565_v44  ;;  %v612_v47 = vadd.f32 %v1782_v33, %v611_v45 }
  0xfd   : > { %v567_v48 = vadd.f32 %v1792_v40, %v566_v46  ;;  %v613_v49 = vadd.f32 %v1794_v41, %v612_v47  ;;  %v1806_v50 = vpop.f32.mrb[8].mxu0  ;;  %v1808_v51 = vpop.f32.mrb[8].mxu1 }
  0xfe   : > { %2372 = vst [vmem:[#allocation11_spill] sm:$0xff] %v1806_v50  ;;  %2373 = vst [vmem:[#allocation12_spill] sm:$0xff] %v1808_v51  ;;  %v1810_v52 = vpop.f32.mrb[9].mxu0  ;;  %v1812_v53 = vpop.f32.mrb[9].mxu1 }
  0xff   : > { %2374 = vst [vmem:[#allocation13_spill] sm:$0xff] %v1812_v53  ;;  %v1814_v54 = vpop.f32.mrb[10].mxu0  ;;  %v1816_v55 = vpop.f32.mrb[10].mxu1  ;;  %v568_v62 = vrot.slane %v567_v48, 4  ;;  %v614_v5 = vrot.slane %v613_v49, 4 }
 0x100   : > { %2375 = vst [vmem:[#allocation14_spill] sm:$0xff] %v1814_v54  ;;  %2376 = vst [vmem:[#allocation15_spill] sm:$0xff] %v1816_v55  ;;  %v1818_v56 = vpop.f32.mrb[11].mxu0  ;;  %v1820_v57 = vpop.f32.mrb[11].mxu1 }
 0x101   : > { %2377 = vst [vmem:[#allocation16_spill] sm:$0xff] %v1820_v57  ;;  %v584_v58 = vadd.f32 %v1818_v56, %v1810_v52  ;;  %v630_v59 = vadd.f32 %v1820_v57, %v1812_v53  ;;  %v569_v12 = vadd.f32 %v568_v62, %v567_v48  ;;  %v615_v15 = vadd.f32 %v614_v5, %v613_v49  ;;  %v550_v62 = vld [vmem:[%s2342_s2] sm:$0x1] }
 0x103   : > { %v585_v60 = vadd.f32 %v1806_v50, %v584_v58  ;;  %v631_v61 = vadd.f32 %v1808_v51, %v630_v59  ;;  %v570_v18 = vrot.slane %v569_v12, 2  ;;  %v616_v29 = vrot.slane %v615_v15, 2 }
 0x105   : > { %v1828_v63 = vpop.f32.mrb[12].mxu0  ;;  %v1830_v0 = vpop.f32.mrb[12].mxu1  ;;  %v586_v1 = vadd.f32 %v1814_v54, %v585_v60  ;;  %v632_v2 = vadd.f32 %v1816_v55, %v631_v61  ;;  %v571_v34 = vadd.f32 %v570_v18, %v569_v12  ;;  %v617_v39 = vadd.f32 %v616_v29, %v615_v15 }
 0x106   : > { %2378 = vst [vmem:[#allocation17_spill] sm:$0xff] %v1828_v63  ;;  %v1834_v3 = vpop.f32.mrb[13].mxu0  ;;  %v1836_v4 = vpop.f32.mrb[13].mxu1 }
 0x107   : > { %2379 = vst [vmem:[#allocation18_spill] sm:$0xff] %v1834_v3  ;;  %2380 = vst [vmem:[#allocation19_spill] sm:$0xff] %v1836_v4  ;;  %v587_v6 = vadd.f32 %v586_v1, %v1834_v3  ;;  %v633_v7 = vadd.f32 %v632_v2, %v1836_v4  ;;  %v1840_v8 = vpop.f32.mrb[14].mxu0  ;;  %v1842_v9 = vpop.f32.mrb[14].mxu1  ;;  %v572_v46 = vrot.slane %v571_v34, 1  ;;  %v618_v58 = vrot.slane %v617_v39, 1 }
 0x108   : > { %2381 = vst [vmem:[#allocation20_spill] sm:$0xff] %v1840_v8  ;;  %v1844_v10 = vpop.f32.mrb[15].mxu0  ;;  %v1846_v11 = vpop.f32.mrb[15].mxu1 }
 0x109   : > { %2382 = vst [vmem:[#allocation21_spill] sm:$0xff] %v1844_v10  ;;  %2383 = vst [vmem:[#allocation22_spill] sm:$0xff] %v1846_v11  ;;  %v588_v13 = vadd.f32 %v587_v6, %v1844_v10  ;;  %v634_v14 = vadd.f32 %v633_v7, %v1846_v11  ;;  %v573_v60 = vadd.f32 %v572_v46, %v571_v34  ;;  %v644_v7 = vmul.f32 256.0, %v550_v62 }
 0x10a   : > { %v619_v2 = vadd.f32 %v618_v58, %v617_v39 }
 0x10b   : > { %v589_v16 = vadd.f32 %v1828_v63, %v588_v13  ;;  %v635_v17 = vadd.f32 %v1830_v0, %v634_v14  ;;  %v646_v14 = vlaneseq }
 0x10d   : > { %v590_v19 = vadd.f32 %v1840_v8, %v589_v16  ;;  %v636_v28 = vadd.f32 %v1842_v9, %v635_v17  ;;  %v647_v15 = vand.u32 127, %v646_v14 }
 0x10f   : > { %v591_v30 = vrot.slane %v590_v19, 4  ;;  %v637_v31 = vrot.slane %v636_v28, 4  ;;  %v656_v16 = vand.u32 1, %v647_v15 }
 0x111   : > { %v592_v35 = vadd.f32 %v591_v30, %v590_v19  ;;  %v638_v38 = vadd.f32 %v637_v31, %v636_v28  ;;  %vm1859_vm2 = vcmp.lt.s32.totalorder %v656_v16, 1  ;;  %v675_v30 = vand.u32 3, %v647_v15 }
 0x113   : > { %v593_v44 = vrot.slane %v592_v35, 2  ;;  %v639_v45 = vrot.slane %v638_v38, 2  ;;  %vm1867_vm3 = vcmp.lt.s32.totalorder %v675_v30, 2 }
 0x115   : > { %v594_v47 = vadd.f32 %v593_v44, %v592_v35  ;;  %v640_v48 = vadd.f32 %v639_v45, %v638_v38  ;;  %v689_v38 = vshrl.u32 %v646_v14, 7 }
 0x117   : > { %v595_v49 = vrot.slane %v594_v47, 1  ;;  %v641_v61 = vrot.slane %v640_v48, 1  ;;  %v1873_v46 = vsub.s32 0, %v689_v38 }
 0x119   : > { %v596_v59 = vadd.f32 %v595_v49, %v594_v47  ;;  %v642_v6 = vadd.f32 %v641_v61, %v640_v48 }
 0x11b   : > { %v597_v1 = vadd.f32 %v596_v59, %v573_v60 }
 0x11d   : > { %v620_v5 = vadd.f32 %v619_v2, %v597_v1 }
 0x11f   : > { %v643_v12 = vadd.f32 %v642_v6, %v620_v5 }
 0x121   : > { %v645_v13 = vadd.f32 %v644_v7, %v643_v12 }
 0x123   : > { %648 = vrot.lane.b32.xlu0 %v645_v13, %s1675_s26 }
 0x127   : > { %650 = vrot.lane.b32.xlu0 %v645_v13, %s1676_s27 }
 0x195   : > { %v649_v17 = vpop.permute.xlu0 %648 }
 0x199   : > { %v651_v19 = vpop.permute.xlu0 %650 }
 0x19a   : > { %v665_v28 = vsel %vm1859_vm2, %v649_v17, %v651_v19 }
 0x19b   : > { %v666_v29 = vadd.f32 %v665_v28, %v645_v13 }
 0x19d   : > { %667 = vrot.lane.b32.xlu1 %v666_v29, %s1677_s28 }
 0x1a1   : > { %669 = vrot.lane.b32.xlu1 %v666_v29, %s1678_s29 }
 0x20f   : > { %v668_v31 = vpop.permute.xlu1 %667 }
 0x213   : > { %v670_v35 = vpop.permute.xlu1 %669 }
 0x214   : > { %v684_v39 = vsel %vm1867_vm3, %v668_v31, %v670_v35 }
 0x215   : > { %v685_v44 = vadd.f32 %v684_v39, %v666_v29 }
 0x217   : > { %v686_v45 = vmul.f32 0.0009765625, %v685_v44 }
 0x219   : > { %v1875_v47 = vsub.f32 %v550_v62, %v686_v45 }
 0x21b   : > { %v1879_v48 = vrot.slane %v1875_v47, %v1873_v46 }
 0x21d   : > { %v692_v49 = vadd.f32 %v1879_v48, %v1762_v22  ;;  %v693_v58 = vadd.f32 %v1879_v48, %v1770_v26  ;;  %v694_v59 = vadd.f32 %v1758_v20, %v1879_v48  ;;  %v695_v60 = vadd.f32 %v1766_v24, %v1879_v48 }
 0x21e   : > { %v696_v61 = vadd.f32 %v1879_v48, %v1786_v36  ;;  %v697_v62 = vadd.f32 %v1879_v48, %v1796_v42  ;;  %v698_v1 = vadd.f32 %v1780_v32, %v1879_v48  ;;  %v699_v2 = vadd.f32 %v1792_v40, %v1879_v48 }
 0x21f   : > { %v722_v5 = vadd.f32 %v1879_v48, %v1810_v52  ;;  %v723_v6 = vadd.f32 %v1879_v48, %v1818_v56  ;;  %v724_v7 = vadd.f32 %v1806_v50, %v1879_v48  ;;  %v725_v12 = vadd.f32 %v1814_v54, %v1879_v48 }
 0x220   : > { %v726_v13 = vadd.f32 %v1879_v48, %v1834_v3  ;;  %v727_v14 = vadd.f32 %v1879_v48, %v1844_v10  ;;  %v728_v15 = vadd.f32 %v1828_v63, %v1879_v48  ;;  %v729_v16 = vadd.f32 %v1840_v8, %v1879_v48 }
 0x221   : > { %v752_v17 = vadd.f32 %v1879_v48, %v1764_v23  ;;  %v753_v19 = vadd.f32 %v1879_v48, %v1772_v27  ;;  %v754_v28 = vadd.f32 %v1760_v21, %v1879_v48  ;;  %v755_v29 = vadd.f32 %v1768_v25, %v1879_v48 }
 0x222   : > { %v700_v30 = vmul.f32 %v692_v49, %v692_v49  ;;  %v701_v31 = vmul.f32 %v693_v58, %v693_v58  ;;  %v756_v35 = vadd.f32 %v1879_v48, %v1788_v37  ;;  %v757_v38 = vadd.f32 %v1879_v48, %v1798_v43 }
 0x223   : > { %v758_v39 = vadd.f32 %v1782_v33, %v1879_v48  ;;  %v759_v44 = vadd.f32 %v1794_v41, %v1879_v48  ;;  %v702_v45 = vmul.f32 %v694_v59, %v694_v59  ;;  %v730_v21 = vmul.f32 %v722_v5, %v722_v5 }
 0x224   : > { %v708_v27 = vadd.f32 %v701_v31, %v700_v30  ;;  %v731_v23 = vmul.f32 %v723_v6, %v723_v6  ;;  %v782_v49 = vadd.f32 %v1879_v48, %v1812_v53  ;;  %v783_v58 = vadd.f32 %v1879_v48, %v1820_v57 }
 0x225   : > { %v784_v37 = vadd.f32 %v1808_v51, %v1879_v48  ;;  %v703_v43 = vmul.f32 %v695_v60, %v695_v60  ;;  %v732_v8 = vmul.f32 %v724_v7, %v724_v7  ;;  %v760_v63 = vmul.f32 %v752_v17, %v752_v17 }
 0x226   : > { %v709_v25 = vadd.f32 %v708_v27, %v702_v45  ;;  %v738_v33 = vadd.f32 %v731_v23, %v730_v21  ;;  %v785_v59 = vadd.f32 %v1816_v55, %v1879_v48  ;;  %v786_v5 = vadd.f32 %v1879_v48, %v1836_v4 }
 0x227   : > { %v787_v6 = vadd.f32 %v1879_v48, %v1846_v11  ;;  %v761_v30 = vmul.f32 %v753_v19, %v753_v19  ;;  %v704_v31 = vmul.f32 %v696_v61, %v696_v61  ;;  %v733_v53 = vmul.f32 %v725_v12, %v725_v12 }
 0x228   : > { %v710_v57 = vadd.f32 %v709_v25, %v703_v43  ;;  %v739_v41 = vadd.f32 %v738_v33, %v732_v8  ;;  %v762_v51 = vmul.f32 %v754_v28, %v754_v28  ;;  %v790_v27 = vmul.f32 %v782_v49, %v782_v49 }
 0x229   : > { %v768_v60 = vadd.f32 %v761_v30, %v760_v63  ;;  %v791_v7 = vmul.f32 %v783_v58, %v783_v58  ;;  %v705_v21 = vmul.f32 %v697_v62, %v697_v62  ;;  %v734_v17 = vmul.f32 %v726_v13, %v726_v13 }
 0x22a   : > { %v711_v23 = vadd.f32 %v710_v57, %v704_v31  ;;  %v740_v45 = vadd.f32 %v739_v41, %v733_v53  ;;  %v706_v55 = vmul.f32 %v698_v1, %v698_v1  ;;  %v735_v10 = vmul.f32 %v727_v14, %v727_v14 }
 0x22b   : > { %v763_v3 = vmul.f32 %v755_v29, %v755_v29  ;;  %v769_v4 = vadd.f32 %v768_v60, %v762_v51  ;;  %v792_v11 = vmul.f32 %v784_v37, %v784_v37  ;;  %v798_v19 = vadd.f32 %v791_v7, %v790_v27 }
 0x22c   : > { %v712_v54 = vadd.f32 %v711_v23, %v705_v21  ;;  %v741_v50 = vadd.f32 %v740_v45, %v734_v17  ;;  %v707_v61 = vmul.f32 %v699_v2, %v699_v2  ;;  %v736_v25 = vmul.f32 %v728_v15, %v728_v15 }
 0x22d   : > { %v764_v43 = vmul.f32 %v756_v35, %v756_v35  ;;  %v770_v33 = vadd.f32 %v769_v4, %v763_v3  ;;  %v793_v12 = vmul.f32 %v785_v59, %v785_v59  ;;  %v799_v28 = vadd.f32 %v798_v19, %v792_v11 }
 0x22e   : > { %v713_v8 = vadd.f32 %v712_v54, %v706_v55  ;;  %v742_v63 = vadd.f32 %v741_v50, %v735_v10  ;;  %v788_v57 = vadd.f32 %v1830_v0, %v1879_v48  ;;  %v737_v41 = vmul.f32 %v729_v16, %v729_v16 }
 0x22f   : > { %v765_v53 = vmul.f32 %v757_v38, %v757_v38  ;;  %v771_v62 = vadd.f32 %v770_v33, %v764_v43  ;;  %v794_v13 = vmul.f32 %v786_v5, %v786_v5  ;;  %v800_v14 = vadd.f32 %v799_v28, %v793_v12 }
 0x230   : > { %v714_v1 = vadd.f32 %v713_v8, %v707_v61  ;;  %v743_v51 = vadd.f32 %v742_v63, %v736_v25  ;;  %v789_v37 = vadd.f32 %v1842_v9, %v1879_v48  ;;  %v766_v2 = vmul.f32 %v758_v39, %v758_v39 }
 0x231   : > { %v772_v15 = vadd.f32 %v771_v62, %v765_v53  ;;  %v795_v50 = vmul.f32 %v787_v6, %v787_v6  ;;  %v801_v55 = vadd.f32 %v800_v14, %v794_v13  ;;  %v767_v4 = vmul.f32 %v759_v44, %v759_v44 }
 0x232   : > { %v715_v3 = vrot.slane %v714_v1, 4  ;;  %v744_v54 = vadd.f32 %v743_v51, %v737_v41  ;;  %v796_v16 = vmul.f32 %v788_v57, %v788_v57  ;;  %v797_v59 = vmul.f32 %v789_v37, %v789_v37 }
 0x233   : > { %v773_v10 = vadd.f32 %v772_v15, %v766_v2  ;;  %v802_v35 = vadd.f32 %v801_v55, %v795_v50  ;;  %v552_v50 = vld [vmem:[%s2342_s2 + $0x2] sm:$0x1] }
 0x234   : > { %v716_v11 = vadd.f32 %v715_v3, %v714_v1  ;;  %v745_v29 = vrot.slane %v744_v54, 4  ;;  %v551_v3 = vld [vmem:[%s2342_s2 + $0x1] sm:$0x1] }
 0x235   : > { %v774_v38 = vadd.f32 %v773_v10, %v767_v4  ;;  %v803_v5 = vadd.f32 %v802_v35, %v796_v16 }
 0x236   : > { %v717_v49 = vrot.slane %v716_v11, 2  ;;  %v746_v58 = vadd.f32 %v745_v29, %v744_v54 }
 0x237   : > { %v775_v30 = vrot.slane %v774_v38, 4  ;;  %v804_v39 = vadd.f32 %v803_v5, %v797_v59 }
 0x238   : > { %v718_v31 = vadd.f32 %v717_v49, %v716_v11  ;;  %v747_v48 = vrot.slane %v746_v58, 2 }
 0x239   : > { %v776_v60 = vadd.f32 %v775_v30, %v774_v38  ;;  %v805_v6 = vrot.slane %v804_v39, 4 }
 0x23a   : > { %v719_v27 = vrot.slane %v718_v31, 1  ;;  %v748_v7 = vadd.f32 %v747_v48, %v746_v58 }
 0x23b   : > { %v777_v21 = vrot.slane %v776_v60, 2  ;;  %v806_v17 = vadd.f32 %v805_v6, %v804_v39 }
 0x23c   : > { %v720_v44 = vadd.f32 %v719_v27, %v718_v31  ;;  %v749_v23 = vrot.slane %v748_v7, 1 }
 0x23d   : > { %v778_v45 = vadd.f32 %v777_v21, %v776_v60  ;;  %v807_v61 = vrot.slane %v806_v17, 2 }
 0x23e   : > { %v750_v19 = vadd.f32 %v749_v23, %v748_v7 }
 0x23f   : > { %v779_v25 = vrot.slane %v778_v45, 1  ;;  %v808_v33 = vadd.f32 %v807_v61, %v806_v17  ;;  %v2389_v17 = vld [vmem:[#allocation14_spill] sm:$0xff] }
 0x240   : > { %v751_v43 = vadd.f32 %v750_v19, %v720_v44  ;;  %v2390_v19 = vld [vmem:[#allocation18_spill] sm:$0xff] }
 0x241   : > { %v780_v8 = vadd.f32 %v779_v25, %v778_v45  ;;  %v809_v63 = vrot.slane %v808_v33, 1  ;;  %v2391_v25 = vld [vmem:[#allocation21_spill] sm:$0xff] }
 0x243   : > { %v781_v12 = vadd.f32 %v780_v8, %v751_v43  ;;  %v810_v28 = vadd.f32 %v809_v63, %v808_v33  ;;  %v2392_v63 = vld [vmem:[#allocation17_spill] sm:$0xff] }
 0x245   : > { %v811_v57 = vadd.f32 %v810_v28, %v781_v12 }
 0x247   : > { %814 = vrot.lane.b32.xlu1 %v811_v57, %s1676_s27  ;;  %812 = vrot.lane.b32.xlu0 %v811_v57, %s1675_s26 }
 0x2b9   : > { %v815_v41 = vpop.permute.xlu1 %814  ;;  %v813_v53 = vpop.permute.xlu0 %812 }
 0x2ba   : > { %v816_v62 = vsel %vm1859_vm2, %v813_v53, %v815_v41  ;;  %v2393_v41 = vld [vmem:[#allocation20_spill] sm:$0xff] }
 0x2bb   : > { %v817_v1 = vadd.f32 %v816_v62, %v811_v57 }
 0x2bd   : > { %820 = vrot.lane.b32.xlu1 %v817_v1, %s1678_s29  ;;  %818 = vrot.lane.b32.xlu0 %v817_v1, %s1677_s28 }
 0x32f   : > { %v821_v51 = vpop.permute.xlu1 %820  ;;  %v819_v13 = vpop.permute.xlu0 %818 }
 0x330   : > { %v822_v14 = vsel %vm1867_vm3, %v819_v13, %v821_v51 }
 0x331   : > { %v823_v37 = vadd.f32 %v822_v14, %v817_v1 }
 0x333   : > { %v824_v2 = vmul.f32 0.0009765625, %v823_v37 }
 0x335   : > { %v825_v15 = vadd.f32 1e-05, %v824_v2 }
 0x337   : > { %1601 = vrsqrt.f32 %v825_v15 }
 0x341   : > { %v1602_v18 = vpop.eup %1601 }
 0x342   : > { %v827_v54 = vmul.f32 %v1602_v18, %v551_v3 }
 0x344   : > { %v828_v55 = vmul.f32 %v827_v54, %v1875_v47  ;;  %v1961_v4 = vrot.slane %v827_v54, %v1873_v46 }
 0x346   : > { %v829_v34 = vadd.f32 %v828_v55, %v552_v50  ;;  %v834_v10 = vmul.f32 %v1961_v4, %v1762_v22  ;;  %v835_v11 = vmul.f32 %v1961_v4, %v1770_v26  ;;  %v836_v29 = vmul.f32 %v1758_v20, %v1961_v4 }
 0x347   : > { %v837_v16 = vmul.f32 %v1766_v24, %v1961_v4  ;;  %v838_v47 = vmul.f32 %v1961_v4, %v1786_v36  ;;  %v839_v38 = vmul.f32 %v1961_v4, %v1796_v42  ;;  %v840_v22 = vmul.f32 %v1780_v32, %v1961_v4 }
 0x348   : > { %v1972_v35 = vrot.slane %v829_v34, %v1873_v46  ;;  %v841_v26 = vmul.f32 %v1792_v40, %v1961_v4  ;;  %v951_v58 = vmul.f32 %v1961_v4, %v1810_v52  ;;  %v952_v59 = vmul.f32 %v1961_v4, %v1818_v56  ;;  %v2388_v56 = vld [vmem:[#allocation11_spill] sm:$0xff] }
 0x349   : > { %v953_v44 = vmul.f32 %v2388_v56, %v1961_v4  ;;  %v954_v45 = vmul.f32 %v2389_v17, %v1961_v4  ;;  %v955_v61 = vmul.f32 %v1961_v4, %v2390_v19  ;;  %v956_v43 = vmul.f32 %v1961_v4, %v2391_v25 }
 0x34a   : > { %v1983_v20 = vadd.f32 %v1972_v35, %v834_v10  ;;  %v1986_v24 = vadd.f32 %v1972_v35, %v835_v11  ;;  %v1989_v46 = vadd.f32 %v1972_v35, %v836_v29  ;;  %v1992_v36 = vadd.f32 %v1972_v35, %v837_v16 }
 0x34b   : > { %v1995_v42 = vadd.f32 %v1972_v35, %v838_v47  ;;  %v1998_v32 = vadd.f32 %v1972_v35, %v839_v38  ;;  %v2001_v40 = vadd.f32 %v1972_v35, %v840_v22  ;;  %v2004_v49 = vadd.f32 %v1972_v35, %v841_v26 }
 0x34c   : > { %v862_v5 = vmin.f32 %v1983_v20, 0.0  ;;  %v863_v30 = vmin.f32 %v1986_v24, 0.0  ;;  %v864_v31 = vmin.f32 %v1989_v46, 0.0  ;;  %v865_v48 = vmin.f32 %v1992_v36, 0.0 }
 0x34d   : > { %v866_v39 = vmin.f32 %v1995_v42, 0.0  ;;  %v867_v60 = vmin.f32 %v1998_v32, 0.0  ;;  %v868_v27 = vmin.f32 %v2001_v40, 0.0  ;;  %v869_v7 = vmin.f32 %v2004_v49, 0.0 }
 0x34e   : > { %v870_v52 = vmul.f32 1.442695, %v862_v5  ;;  %v872_v6 = vmul.f32 1.442695, %v863_v30  ;;  %v874_v21 = vmul.f32 1.442695, %v864_v31  ;;  %v957_v12 = vmul.f32 %v2392_v63, %v1961_v4 }
 0x34f   : > { %v876_v23 = vmul.f32 1.442695, %v865_v48  ;;  %v878_v33 = vmul.f32 1.442695, %v866_v39  ;;  %v880_v8 = vmul.f32 1.442695, %v867_v60  ;;  %v958_v53 = vmul.f32 %v2393_v41, %v1961_v4 }
 0x350   : > { %1603 = vpow2.f32 %v870_v52  ;;  %v882_v28 = vmul.f32 1.442695, %v868_v27  ;;  %v884_v57 = vmul.f32 1.442695, %v869_v7  ;;  %v2031_v62 = vadd.f32 %v951_v58, %v1972_v35  ;;  %v2395_v41 = vld [vmem:[#allocation6_spill] sm:$0xff] }
 0x351   : > { %1605 = vpow2.f32 %v872_v6  ;;  %v2034_v1 = vadd.f32 %v952_v59, %v1972_v35  ;;  %v2037_v51 = vadd.f32 %v953_v44, %v1972_v35  ;;  %v2040_v13 = vadd.f32 %v954_v45, %v1972_v35 }
 0x352   : > { %1607 = vpow2.f32 %v874_v21  ;;  %v2043_v14 = vadd.f32 %v955_v61, %v1972_v35  ;;  %v2046_v37 = vadd.f32 %v956_v43, %v1972_v35  ;;  %v2049_v2 = vadd.f32 %v957_v12, %v1972_v35 }
 0x353   : > { %1609 = vpow2.f32 %v876_v23  ;;  %vm854_vm5 = vcmp.gt.f32.partialorder %v1983_v20, 0.0  ;;  %vm855_vm6 = vcmp.gt.f32.partialorder %v1986_v24, 0.0  ;;  %v2054_v15 = vadd.f32 %v958_v53, %v1972_v35 }
 0x354   : > { %1611 = vpow2.f32 %v878_v33  ;;  %v975_v3 = vmin.f32 %v2031_v62, 0.0  ;;  %v976_v18 = vmin.f32 %v2034_v1, 0.0  ;;  %v977_v54 = vmin.f32 %v2037_v51, 0.0 }
 0x355   : > { %1613 = vpow2.f32 %v880_v8  ;;  %v978_v50 = vmin.f32 %v2040_v13, 0.0  ;;  %v979_v55 = vmin.f32 %v2043_v14, 0.0  ;;  %v980_v34 = vmin.f32 %v2046_v37, 0.0 }
 0x356   : > { %1615 = vpow2.f32 %v882_v28  ;;  %vm856_vm7 = vcmp.gt.f32.partialorder %v1989_v46, 0.0  ;;  %v981_v10 = vmin.f32 %v2049_v2, 0.0  ;;  %v983_v11 = vmul.f32 1.442695, %v975_v3  ;;  %v2394_v28 = vld [vmem:[#allocation4_spill] sm:$0xff] }
 0x357   : > { %1617 = vpow2.f32 %v884_v57  ;;  %v985_v29 = vmul.f32 1.442695, %v976_v18  ;;  %vm857_vm8 = vcmp.gt.f32.partialorder %v1992_v36, 0.0  ;;  %v982_v16 = vmin.f32 %v2054_v15, 0.0 }
 0x358   : > { %v987_v47 = vmul.f32 1.442695, %v977_v54  ;;  %v989_v38 = vmul.f32 1.442695, %v978_v50  ;;  %vm858_vm9 = vcmp.gt.f32.partialorder %v1995_v42, 0.0  ;;  %vm859_vm10 = vcmp.gt.f32.partialorder %v1998_v32, 0.0 }
 0x359   : > { %1619 = vpow2.f32 %v983_v11  ;;  %v991_v26 = vmul.f32 1.442695, %v979_v55  ;;  %vm860_vm11 = vcmp.gt.f32.partialorder %v2001_v40, 0.0  ;;  %v993_v5 = vmul.f32 1.442695, %v980_v34  ;;  %v2397_v50 = vld [vmem:[#allocation5_spill] sm:$0xff] }
 0x35a   : > { %v1604_v22 = vpop.eup %1603  ;;  %1621 = vpow2.f32 %v985_v29  ;;  %vm861_vm12 = vcmp.gt.f32.partialorder %v2004_v49, 0.0  ;;  %v995_v48 = vmul.f32 1.442695, %v981_v10  ;;  %v997_v7 = vmul.f32 1.442695, %v982_v16  ;;  %v2398_v29 = vld [vmem:[#allocation8_spill] sm:$0xff] }
 0x35b   : > { %v1606_v58 = vpop.eup %1605  ;;  %v1381_v59 = vadd.f32 -1.0, %v1604_v22  ;;  %1623 = vpow2.f32 %v987_v47  ;;  %vm967_vm13 = vcmp.gt.f32.partialorder %v2031_v62, 0.0  ;;  %vm968_vm14 = vcmp.gt.f32.partialorder %v2034_v1, 0.0  ;;  %v2399_v16 = vld [vmem:[#allocation10_spill] sm:$0xff] }
 0x35c   : > { %v1608_v30 = vpop.eup %1607  ;;  %v1382_v31 = vadd.f32 -1.0, %v1606_v58  ;;  %1625 = vpow2.f32 %v989_v38  ;;  %vm969_vm15 = vcmp.gt.f32.partialorder %v2037_v51, 0.0  ;;  %vm970_vm0 = vcmp.gt.f32.partialorder %v2040_v13, 0.0 }
 0x35d   : > { %v1610_v39 = vpop.eup %1609  ;;  %v1383_v60 = vadd.f32 -1.0, %v1608_v30  ;;  %v894_v27 = vsel %vm854_vm5, %v1983_v20, %v1381_v59  ;;  %1627 = vpow2.f32 %v991_v26  ;;  %vm971_vm1 = vcmp.gt.f32.partialorder %v2043_v14, 0.0  ;;  %v2400_v26 = vld [vmem:[#allocation7_spill] sm:$0xff]  ;;  %v2401_v59 = vld [vmem:[#allocation9_spill] sm:$0xff] }
 0x35e   : > { %v1612_v52 = vpop.eup %1611  ;;  %v1384_v6 = vadd.f32 -1.0, %v1610_v39  ;;  %v895_v21 = vsel %vm855_vm6, %v1986_v24, %v1382_v31  ;;  %v1473_v56 = vpack.c.bf16 %v894_v27, %v894_v27  ;;  %1629 = vpow2.f32 %v993_v5 }
 0x35f   : > { %v1614_v44 = vpop.eup %1613  ;;  %v1385_v23 = vadd.f32 -1.0, %v1612_v52  ;;  %v896_v20 = vsel %vm856_vm7, %v1989_v46, %v1383_v60  ;;  %v1474_v17 = vpack.c.bf16 %v895_v21, %v895_v21  ;;  %1631 = vpow2.f32 %v995_v48 }
 0x360   : > { %v1616_v45 = vpop.eup %1615  ;;  %v1386_v19 = vadd.f32 -1.0, %v1614_v44  ;;  %v897_v24 = vsel %vm857_vm8, %v1992_v36, %v1384_v6  ;;  %v1475_v61 = vpack.c.bf16 %v896_v20, %v896_v20  ;;  %935 = vst.msk [vmem:[%s2075_s9] sm:$0xf] %vm934_vm4, %v1473_v56  ;;  %1633 = vpow2.f32 %v997_v7 }
 0x361   : > { %v1618_v25 = vpop.eup %1617  ;;  %v1387_v46 = vadd.f32 -1.0, %v1616_v45  ;;  %v898_v43 = vsel %vm858_vm9, %v1995_v42, %v1385_v23  ;;  %v1476_v33 = vpack.c.bf16 %v897_v24, %v897_v24  ;;  %936 = vst.msk [vmem:[%s2075_s9 + $0x4] sm:$0xf] %vm934_vm4, %v1474_v17  ;;  %vm972_vm2 = vcmp.gt.f32.partialorder %v2046_v37, 0.0 }
 0x362   : > { %v1388_v36 = vadd.f32 -1.0, %v1618_v25  ;;  %v899_v8 = vsel %vm859_vm10, %v1998_v32, %v1386_v19  ;;  %v1477_v63 = vpack.c.bf16 %v898_v43, %v898_v43  ;;  %937 = vst.msk [vmem:[%s2075_s9 + $0x8] sm:$0xf] %vm934_vm4, %v1475_v61  ;;  %v1064_v57 = vmul.f32 %v1961_v4, %v2394_v28 }
 0x363   : > { %v900_v42 = vsel %vm860_vm11, %v2001_v40, %v1387_v46  ;;  %v1478_v12 = vpack.c.bf16 %v899_v8, %v899_v8  ;;  %938 = vst.msk [vmem:[%s2075_s9 + $0xc] sm:$0xf] %vm934_vm4, %v1476_v33  ;;  %v1065_v32 = vmul.f32 %v1961_v4, %v2395_v41  ;;  %v1620_v53 = vpop.eup %1619  ;;  %vm973_vm3 = vcmp.gt.f32.partialorder %v2049_v2, 0.0  ;;  %v2396_v40 = vld [vmem:[#allocation3_spill] sm:$0xff] }
 0x364   : > { %v901_v3 = vsel %vm861_vm12, %v2004_v49, %v1388_v36  ;;  %v1479_v18 = vpack.c.bf16 %v900_v42, %v900_v42  ;;  %939 = vst.msk [vmem:[%s2075_s9 + $0x10] sm:$0xf] %vm934_vm4, %v1477_v63  ;;  %v1066_v54 = vmul.f32 %v2396_v40, %v1961_v4  ;;  %v1067_v55 = vmul.f32 %v2397_v50, %v1961_v4  ;;  %v1622_v34 = vpop.eup %1621 }
 0x365   : > { %v1480_v10 = vpack.c.bf16 %v901_v3, %v901_v3  ;;  %940 = vst.msk [vmem:[%s2075_s9 + $0x14] sm:$0xf] %vm934_vm4, %v1478_v12  ;;  %v1397_v11 = vadd.f32 -1.0, %v1620_v53  ;;  %v1068_v49 = vmul.f32 %v1961_v4, %v2398_v29  ;;  %v1069_v47 = vmul.f32 %v1961_v4, %v2399_v16  ;;  %v1624_v38 = vpop.eup %1623 }
 0x366   : > { %941 = vst.msk [vmem:[%s2075_s9 + $0x18] sm:$0xf] %vm934_vm4, %v1479_v18  ;;  %v1398_v22 = vadd.f32 -1.0, %v1622_v34  ;;  %v1070_v58 = vmul.f32 %v2400_v26, %v1961_v4  ;;  %v1071_v5 = vmul.f32 %v2401_v59, %v1961_v4  ;;  %v2139_v30 = vadd.f32 %v1064_v57, %v1972_v35  ;;  %v1626_v31 = vpop.eup %1625 }
 0x367   : > { %942 = vst.msk [vmem:[%s2075_s9 + $0x1c] sm:$0xf] %vm934_vm4, %v1480_v10  ;;  %v1399_v48 = vadd.f32 -1.0, %v1624_v38  ;;  %v1007_v39 = vsel %vm967_vm13, %v2031_v62, %v1397_v11  ;;  %v2147_v60 = vadd.f32 %v1065_v32, %v1972_v35  ;;  %v2150_v27 = vadd.f32 %v1066_v54, %v1972_v35  ;;  %v1628_v7 = vpop.eup %1627  ;;  %v2402_v11 = vld [vmem:[#allocation13_spill] sm:$0xff] }
 0x368   : > { %v1400_v52 = vadd.f32 -1.0, %v1626_v31  ;;  %v1008_v6 = vsel %vm968_vm14, %v2034_v1, %v1398_v22  ;;  %v1481_v21 = vpack.c.bf16 %v1007_v39, %v1007_v39  ;;  %v2156_v56 = vadd.f32 %v1067_v55, %v1972_v35  ;;  %v1630_v44 = vpop.eup %1629  ;;  %v2404_v22 = vld [vmem:[#allocation12_spill] sm:$0xff] }
 0x369   : > { %v1401_v62 = vadd.f32 -1.0, %v1628_v7  ;;  %v1009_v23 = vsel %vm969_vm15, %v2037_v51, %v1399_v48  ;;  %v1482_v20 = vpack.c.bf16 %v1008_v6, %v1008_v6  ;;  %v2162_v17 = vadd.f32 %v1068_v49, %v1972_v35  ;;  %v1632_v45 = vpop.eup %1631  ;;  %v2407_v48 = vld [vmem:[#allocation22_spill] sm:$0xff] }
 0x36a   : > { %v1402_v19 = vadd.f32 -1.0, %v1630_v44  ;;  %v1010_v1 = vsel %vm970_vm0, %v2040_v13, %v1400_v52  ;;  %v1483_v24 = vpack.c.bf16 %v1009_v23, %v1009_v23  ;;  %1413 = vst.msk [vmem:[%s2075_s9 + $0x20] sm:$0xf] %vm934_vm4, %v1481_v21  ;;  %v2170_v61 = vadd.f32 %v1069_v47, %v1972_v35  ;;  %v1634_v25 = vpop.eup %1633  ;;  %v2403_v47 = vld [vmem:[#allocation16_spill] sm:$0xff] }
 0x36b   : > { %v1403_v51 = vadd.f32 -1.0, %v1632_v45  ;;  %v1011_v46 = vsel %vm971_vm1, %v2043_v14, %v1401_v62  ;;  %v1484_v43 = vpack.c.bf16 %v1010_v1, %v1010_v1  ;;  %1414 = vst.msk [vmem:[%s2075_s9 + $0x24] sm:$0xf] %vm934_vm4, %v1482_v20  ;;  %v2178_v33 = vadd.f32 %v1070_v58, %v1972_v35  ;;  %v2405_v58 = vld [vmem:[#allocation15_spill] sm:$0xff] }
 0x36c   : > { %v1404_v13 = vadd.f32 -1.0, %v1634_v25  ;;  %v1012_v36 = vsel %vm972_vm2, %v2046_v37, %v1402_v19  ;;  %v1485_v8 = vpack.c.bf16 %v1011_v46, %v1011_v46  ;;  %1415 = vst.msk [vmem:[%s2075_s9 + $0x28] sm:$0xf] %vm934_vm4, %v1483_v24  ;;  %v2186_v63 = vadd.f32 %v1071_v5, %v1972_v35  ;;  %v2406_v5 = vld [vmem:[#allocation19_spill] sm:$0xff] }
 0x36d   : > { %vm974_vm5 = vcmp.gt.f32.partialorder %v2054_v15, 0.0  ;;  %v1013_v14 = vsel %vm973_vm3, %v2049_v2, %v1403_v51  ;;  %v1486_v42 = vpack.c.bf16 %v1012_v36, %v1012_v36  ;;  %1416 = vst.msk [vmem:[%s2075_s9 + $0x2c] sm:$0xf] %vm934_vm4, %v1484_v43  ;;  %v1088_v12 = vmin.f32 %v2139_v30, 0.0 }
 0x36e   : > { %v1014_v37 = vsel %vm974_vm5, %v2054_v15, %v1404_v13  ;;  %v1487_v28 = vpack.c.bf16 %v1013_v14, %v1013_v14  ;;  %1417 = vst.msk [vmem:[%s2075_s9 + $0x30] sm:$0xf] %vm934_vm4, %v1485_v8  ;;  %v1089_v57 = vmin.f32 %v2147_v60, 0.0  ;;  %v1090_v41 = vmin.f32 %v2150_v27, 0.0 }
 0x36f   : > { %v1488_v32 = vpack.c.bf16 %v1014_v37, %v1014_v37  ;;  %1418 = vst.msk [vmem:[%s2075_s9 + $0x34] sm:$0xf] %vm934_vm4, %v1486_v42  ;;  %v1091_v2 = vmin.f32 %v2156_v56, 0.0  ;;  %v1092_v53 = vmin.f32 %v2162_v17, 0.0  ;;  %v1093_v3 = vmin.f32 %v2170_v61, 0.0 }
 0x370   : > { %1419 = vst.msk [vmem:[%s2075_s9 + $0x38] sm:$0xf] %vm934_vm4, %v1487_v28  ;;  %v1094_v15 = vmin.f32 %v2178_v33, 0.0  ;;  %v1095_v18 = vmin.f32 %v2186_v63, 0.0  ;;  %v1096_v40 = vmul.f32 1.442695, %v1088_v12  ;;  %v1177_v29 = vmul.f32 %v1961_v4, %v2402_v11 }
 0x371   : > { %v1098_v54 = vmul.f32 1.442695, %v1089_v57  ;;  %1420 = vst.msk [vmem:[%s2075_s9 + $0x3c] sm:$0xf] %vm934_vm4, %v1488_v32  ;;  %v1100_v50 = vmul.f32 1.442695, %v1090_v41  ;;  %v1178_v38 = vmul.f32 %v1961_v4, %v2403_v47  ;;  %v1179_v26 = vmul.f32 %v2404_v22, %v1961_v4 }
 0x372   : > { %v1102_v55 = vmul.f32 1.442695, %v1091_v2  ;;  %1635 = vpow2.f32 %v1096_v40  ;;  %v1104_v34 = vmul.f32 1.442695, %v1092_v53  ;;  %v1106_v10 = vmul.f32 1.442695, %v1093_v3 }
 0x373   : > { %1637 = vpow2.f32 %v1098_v54  ;;  %v1108_v49 = vmul.f32 1.442695, %v1094_v15  ;;  %v1110_v16 = vmul.f32 1.442695, %v1095_v18  ;;  %v1180_v59 = vmul.f32 %v2405_v58, %v1961_v4 }
 0x374   : > { %1639 = vpow2.f32 %v1100_v50  ;;  %v1181_v31 = vmul.f32 %v1961_v4, %v2406_v5  ;;  %v1182_v39 = vmul.f32 %v1961_v4, %v2407_v48  ;;  %v1183_v7 = vmul.f32 %v1830_v0, %v1961_v4 }
 0x375   : > { %1641 = vpow2.f32 %v1102_v55  ;;  %v1184_v52 = vmul.f32 %v1842_v9, %v1961_v4  ;;  %v2228_v6 = vadd.f32 %v1177_v29, %v1972_v35  ;;  %v2231_v21 = vadd.f32 %v1178_v38, %v1972_v35 }
 0x376   : > { %1643 = vpow2.f32 %v1104_v34  ;;  %v2234_v44 = vadd.f32 %v1179_v26, %v1972_v35  ;;  %v2237_v62 = vadd.f32 %v1180_v59, %v1972_v35  ;;  %v2240_v23 = vadd.f32 %v1181_v31, %v1972_v35 }
 0x377   : > { %1645 = vpow2.f32 %v1106_v10  ;;  %v2243_v0 = vadd.f32 %v1182_v39, %v1972_v35  ;;  %vm1080_vm6 = vcmp.gt.f32.partialorder %v2139_v30, 0.0  ;;  %v2247_v9 = vadd.f32 %v1183_v7, %v1972_v35 }
 0x378   : > { %1647 = vpow2.f32 %v1108_v49  ;;  %vm1081_vm7 = vcmp.gt.f32.partialorder %v2147_v60, 0.0  ;;  %vm1082_vm8 = vcmp.gt.f32.partialorder %v2150_v27, 0.0  ;;  %v2252_v4 = vadd.f32 %v1184_v52, %v1972_v35 }
 0x379   : > { %1649 = vpow2.f32 %v1110_v16  ;;  %vm1083_vm9 = vcmp.gt.f32.partialorder %v2156_v56, 0.0  ;;  %vm1084_vm10 = vcmp.gt.f32.partialorder %v2162_v17, 0.0  ;;  %v1201_v20 = vmin.f32 %v2228_v6, 0.0 }
 0x37a   : > { %v1202_v45 = vmin.f32 %v2231_v21, 0.0  ;;  %vm1085_vm11 = vcmp.gt.f32.partialorder %v2170_v61, 0.0  ;;  %v1203_v19 = vmin.f32 %v2234_v44, 0.0  ;;  %v1204_v1 = vmin.f32 %v2237_v62, 0.0 }
 0x37b   : > { %v1205_v24 = vmin.f32 %v2240_v23, 0.0  ;;  %v1206_v25 = vmin.f32 %v2243_v0, 0.0  ;;  %vm1086_vm12 = vcmp.gt.f32.partialorder %v2178_v33, 0.0  ;;  %v1207_v51 = vmin.f32 %v2247_v9, 0.0 }
 0x37c   : > { %v1636_v35 = vpop.eup %1635  ;;  %v1209_v46 = vmul.f32 1.442695, %v1201_v20  ;;  %v1211_v43 = vmul.f32 1.442695, %v1202_v45  ;;  %v1208_v8 = vmin.f32 %v2252_v4, 0.0  ;;  %vm1087_vm13 = vcmp.gt.f32.partialorder %v2186_v63, 0.0 }
 0x37d   : > { %v1638_v13 = vpop.eup %1637  ;;  %v1421_v36 = vadd.f32 -1.0, %v1636_v35  ;;  %v1213_v14 = vmul.f32 1.442695, %v1203_v19  ;;  %v1215_v42 = vmul.f32 1.442695, %v1204_v1  ;;  %vm1193_vm14 = vcmp.gt.f32.partialorder %v2228_v6, 0.0 }
 0x37e   : > { %v1640_v12 = vpop.eup %1639  ;;  %v1422_v37 = vadd.f32 -1.0, %v1638_v13  ;;  %1651 = vpow2.f32 %v1209_v46  ;;  %v1217_v28 = vmul.f32 1.442695, %v1205_v24  ;;  %v1219_v57 = vmul.f32 1.442695, %v1206_v25 }
 0x37f   : > { %v1642_v41 = vpop.eup %1641  ;;  %v1423_v32 = vadd.f32 -1.0, %v1640_v12  ;;  %v1120_v2 = vsel %vm1080_vm6, %v2139_v30, %v1421_v36  ;;  %1653 = vpow2.f32 %v1211_v43  ;;  %v1221_v53 = vmul.f32 1.442695, %v1207_v51 }
 0x380   : > { %v1644_v3 = vpop.eup %1643  ;;  %v1424_v15 = vadd.f32 -1.0, %v1642_v41  ;;  %v1121_v18 = vsel %vm1081_vm7, %v2147_v60, %v1422_v37  ;;  %v1489_v40 = vpack.c.bf16 %v1120_v2, %v1120_v2  ;;  %1655 = vpow2.f32 %v1213_v14 }
 0x381   : > { %v1646_v54 = vpop.eup %1645  ;;  %v1425_v50 = vadd.f32 -1.0, %v1644_v3  ;;  %v1122_v55 = vsel %vm1082_vm8, %v2150_v27, %v1423_v32  ;;  %v1490_v34 = vpack.c.bf16 %v1121_v18, %v1121_v18  ;;  %1657 = vpow2.f32 %v1215_v42 }
 0x382   : > { %v1648_v30 = vpop.eup %1647  ;;  %v1426_v10 = vadd.f32 -1.0, %v1646_v54  ;;  %v1123_v11 = vsel %vm1083_vm9, %v2156_v56, %v1424_v15  ;;  %v1491_v29 = vpack.c.bf16 %v1122_v55, %v1122_v55  ;;  %1437 = vst.msk [vmem:[%s2075_s9 + $0x40] sm:$0xf] %vm934_vm4, %v1489_v40  ;;  %1659 = vpow2.f32 %v1217_v28 }
 0x383   : > { %v1650_v60 = vpop.eup %1649  ;;  %v1427_v49 = vadd.f32 -1.0, %v1648_v30  ;;  %v1124_v27 = vsel %vm1084_vm10, %v2162_v17, %v1425_v50  ;;  %v1492_v16 = vpack.c.bf16 %v1123_v11, %v1123_v11  ;;  %1438 = vst.msk [vmem:[%s2075_s9 + $0x44] sm:$0xf] %vm934_vm4, %v1490_v34  ;;  %1661 = vpow2.f32 %v1219_v57 }
 0x384   : > { %v1428_v47 = vadd.f32 -1.0, %v1650_v60  ;;  %v1125_v56 = vsel %vm1085_vm11, %v2170_v61, %v1426_v10  ;;  %v1493_v38 = vpack.c.bf16 %v1124_v27, %v1124_v27  ;;  %1439 = vst.msk [vmem:[%s2075_s9 + $0x48] sm:$0xf] %vm934_vm4, %v1491_v29  ;;  %1663 = vpow2.f32 %v1221_v53 }
 0x385   : > { %v1126_v17 = vsel %vm1086_vm12, %v2178_v33, %v1427_v49  ;;  %v1494_v22 = vpack.c.bf16 %v1125_v56, %v1125_v56  ;;  %1440 = vst.msk [vmem:[%s2075_s9 + $0x4c] sm:$0xf] %vm934_vm4, %v1492_v16  ;;  %v1223_v26 = vmul.f32 1.442695, %v1208_v8  ;;  %vm1194_vm15 = vcmp.gt.f32.partialorder %v2231_v21, 0.0 }
 0x386   : > { %v1127_v58 = vsel %vm1087_vm13, %v2186_v63, %v1428_v47  ;;  %v1495_v59 = vpack.c.bf16 %v1126_v17, %v1126_v17  ;;  %1441 = vst.msk [vmem:[%s2075_s9 + $0x50] sm:$0xf] %vm934_vm4, %v1493_v38  ;;  %vm1195_vm0 = vcmp.gt.f32.partialorder %v2234_v44, 0.0  ;;  %vm1196_vm1 = vcmp.gt.f32.partialorder %v2237_v62, 0.0 }
 0x387   : > { %v1496_v61 = vpack.c.bf16 %v1127_v58, %v1127_v58  ;;  %1442 = vst.msk [vmem:[%s2075_s9 + $0x54] sm:$0xf] %vm934_vm4, %v1494_v22  ;;  %1665 = vpow2.f32 %v1223_v26  ;;  %vm1197_vm2 = vcmp.gt.f32.partialorder %v2240_v23, 0.0  ;;  %vm1198_vm3 = vcmp.gt.f32.partialorder %v2243_v0, 0.0 }
 0x388   : > { %v1652_v5 = vpop.eup %1651  ;;  %1443 = vst.msk [vmem:[%s2075_s9 + $0x58] sm:$0xf] %vm934_vm4, %v1495_v59  ;;  %vm1199_vm5 = vcmp.gt.f32.partialorder %v2247_v9, 0.0  ;;  %vm1200_vm6 = vcmp.gt.f32.partialorder %v2252_v4, 0.0 }
 0x389   : > { %v1654_v31 = vpop.eup %1653  ;;  %1444 = vst.msk [vmem:[%s2075_s9 + $0x5c] sm:$0xf] %vm934_vm4, %v1496_v61  ;;  %v1445_v33 = vadd.f32 -1.0, %v1652_v5 }
 0x38a   : > { %v1656_v48 = vpop.eup %1655  ;;  %v1446_v39 = vadd.f32 -1.0, %v1654_v31 }
 0x38b   : > { %v1658_v7 = vpop.eup %1657  ;;  %v1447_v63 = vadd.f32 -1.0, %v1656_v48  ;;  %v1233_v52 = vsel %vm1193_vm14, %v2228_v6, %v1445_v33 }
 0x38c   : > { %v1660_v20 = vpop.eup %1659  ;;  %v1448_v45 = vadd.f32 -1.0, %v1658_v7  ;;  %v1234_v19 = vsel %vm1194_vm15, %v2231_v21, %v1446_v39  ;;  %v1497_v1 = vpack.c.bf16 %v1233_v52, %v1233_v52 }
 0x38d   : > { %v1662_v24 = vpop.eup %1661  ;;  %v1449_v25 = vadd.f32 -1.0, %v1660_v20  ;;  %v1235_v35 = vsel %vm1195_vm0, %v2234_v44, %v1447_v63  ;;  %v1498_v51 = vpack.c.bf16 %v1234_v19, %v1234_v19 }
 0x38e   : > { %v1664_v46 = vpop.eup %1663  ;;  %v1450_v6 = vadd.f32 -1.0, %v1662_v24  ;;  %v1236_v43 = vsel %vm1196_vm1, %v2237_v62, %v1448_v45  ;;  %v1499_v13 = vpack.c.bf16 %v1235_v35, %v1235_v35  ;;  %1461 = vst.msk [vmem:[%s2075_s9 + $0x60] sm:$0xf] %vm934_vm4, %v1497_v1 }
 0x38f   : > { %v1451_v21 = vadd.f32 -1.0, %v1664_v46  ;;  %v1237_v36 = vsel %vm1197_vm2, %v2240_v23, %v1449_v25  ;;  %v1500_v44 = vpack.c.bf16 %v1236_v43, %v1236_v43  ;;  %1462 = vst.msk [vmem:[%s2075_s9 + $0x64] sm:$0xf] %vm934_vm4, %v1498_v51 }
 0x390   : > { %v1238_v8 = vsel %vm1198_vm3, %v2243_v0, %v1450_v6  ;;  %v1501_v62 = vpack.c.bf16 %v1237_v36, %v1237_v36  ;;  %1463 = vst.msk [vmem:[%s2075_s9 + $0x68] sm:$0xf] %vm934_vm4, %v1499_v13 }
 0x391   : > { %v1666_v14 = vpop.eup %1665  ;;  %v1239_v42 = vsel %vm1199_vm5, %v2247_v9, %v1451_v21  ;;  %v1502_v12 = vpack.c.bf16 %v1238_v8, %v1238_v8  ;;  %1464 = vst.msk [vmem:[%s2075_s9 + $0x6c] sm:$0xf] %vm934_vm4, %v1500_v44 }
 0x392   : > { %v1452_v37 = vadd.f32 -1.0, %v1666_v14  ;;  %v1503_v23 = vpack.c.bf16 %v1239_v42, %v1239_v42  ;;  %1465 = vst.msk [vmem:[%s2075_s9 + $0x70] sm:$0xf] %vm934_vm4, %v1501_v62 }
 0x393   : > { %1466 = vst.msk [vmem:[%s2075_s9 + $0x74] sm:$0xf] %vm934_vm4, %v1502_v12 }
 0x394   : > { %v1240_v28 = vsel %vm1200_vm6, %v2252_v4, %v1452_v37  ;;  %1467 = vst.msk [vmem:[%s2075_s9 + $0x78] sm:$0xf] %vm934_vm4, %v1503_v23 }
 0x395   : > { %v1504_v0 = vpack.c.bf16 %v1240_v28, %v1240_v28 }
 0x397   : > { %1468 = vst.msk [vmem:[%s2075_s9 + $0x7c] sm:$0xf] %vm934_vm4, %v1504_v0 }
 0x398 PF: > { %s13_s12 = sadd.s32 1, %s1673_s12  }
 0x399   : > { %p10_p4 = scmp.ge.s32.totalorder %s13_s12, 4  }
 0x39b   :  { %12 = sbr.rel (!%p10_p4) target bundleno = 1 (0x1), region = 68 }

</bundles_post_ra>
